<compile_context>
chip_gen: v5e
topology: v5e:2x2
jax: 0.10.0
libtpu: 0.0.40
codegen_flags: <defaults>
</compile_context>

<pallas_src>
import math

import jax
import jax.numpy as jnp
from jax.experimental import pallas as pl
from jax.experimental.pallas import tpu as pltpu

# Model hyper-parameters (small, consistent with the module's __init__ args)
NUM_LAYERS = 2
D_MODEL = 32
NUM_HEADS = 4
D_HEAD = D_MODEL // NUM_HEADS
D_FF = 64
LN_EPS = 1e-5  # torch.nn.LayerNorm default


# ---------------------------------------------------------------------------
# Fused encoder kernel: one grid step == one batch element, full 2-layer stack.
# ---------------------------------------------------------------------------
def _encoder_kernel(x_ref, maskb_ref,
                    wqkv_ref, bqkv_ref, wo_ref, bo_ref,
                    w1_ref, b1_ref, w2_ref, b2_ref,
                    ln1g_ref, ln1b_ref, ln2g_ref, ln2b_ref,
                    lnfg_ref, lnfb_ref,
                    o_ref):
    H, DH = NUM_HEADS, D_HEAD

    def layer_norm(h, g, b):  # h: (S, D); g, b: (1, D)
        mu = jnp.mean(h, axis=-1, keepdims=True)
        var = jnp.mean((h - mu) ** 2, axis=-1, keepdims=True)
        return (h - mu) * jax.lax.rsqrt(var + LN_EPS) * g + b

    x = x_ref[0].astype(jnp.float32)   # (S, D): this grid step's batch element
    mb = maskb_ref[...]                # (1, 1, S) additive key-padding bias

    for l in range(NUM_LAYERS):
        # --- head-batched fused QKV: (H,S,D) @ (H,D,3*DH) -> (H,S,3*DH) ---
        # The 1/sqrt(DH) softmax scale is pre-folded into the Q weights/bias.
        xb = jnp.broadcast_to(x, (H,) + x.shape)           # cheap leading-dim bcast
        qkv = jnp.einsum("hsd,hde->hse", xb, wqkv_ref[l],
                         preferred_element_type=jnp.float32) + bqkv_ref[l]
        q = qkv[:, :, :DH]
        k = qkv[:, :, DH:2 * DH]
        v = qkv[:, :, 2 * DH:]

        # --- attention scores / softmax / context, batched over heads ---
        # Contraction over the last dims: no explicit k.T / XLU transpose.
        s = jnp.einsum("hqd,hkd->hqk", q, k,
                       preferred_element_type=jnp.float32)  # (H, S, S)
        s = s + mb                                           # broadcast over q, h
        s = s - jnp.max(s, axis=-1, keepdims=True)
        p = jnp.exp(s)
        # divide on the (otherwise idle) EUP slot instead of the VALU
        p = p * pl.reciprocal(jnp.sum(p, axis=-1, keepdims=True), approx=True)
        ctx = jnp.einsum("hqk,hkd->hqd", p, v,
                         preferred_element_type=jnp.float32)  # (H, S, DH)

        # --- out-projection with head-split weights; sum over heads merges them
        #     (avoids the (H,S,DH)->(S,H*DH) transpose) ---
        attn = jnp.einsum("hqd,hde->hqe", ctx, wo_ref[l],
                          preferred_element_type=jnp.float32).sum(axis=0) + bo_ref[l]
        x = layer_norm(x + attn, ln1g_ref[l], ln1b_ref[l])

        # --- FFN (ReLU) + Add & LN2 ---
        h1 = jnp.maximum(
            jnp.dot(x, w1_ref[l], preferred_element_type=jnp.float32) + b1_ref[l],
            0.0)
        ff = jnp.dot(h1, w2_ref[l], preferred_element_type=jnp.float32) + b2_ref[l]
        x = layer_norm(x + ff, ln2g_ref[l], ln2b_ref[l])

    # --- final LayerNorm ---
    o_ref[0] = layer_norm(x, lnfg_ref[...], lnfb_ref[...]).astype(o_ref.dtype)


# ---------------------------------------------------------------------------
# Wrapper
# ---------------------------------------------------------------------------
def encoder_forward(packed, x, mask):
    """x: (B, S, D) f32; mask: (B, 1, S) with 1.0 = attend, 0.0 = masked."""
    B, S, D = x.shape
    # additive key-padding bias (per-call, mask-dependent)
    maskb = (1.0 - mask.astype(jnp.float32)) * jnp.float32(-1e9)   # (B, 1, S)

    weight_names = ["wqkv", "bqkv", "wo", "bo", "w1", "b1", "w2", "b2",
                    "ln1_g", "ln1_b", "ln2_g", "ln2_b", "lnf_g", "lnf_b"]
    weights = [packed[n] for n in weight_names]

    def full_spec(arr):
        nd = arr.ndim
        return pl.BlockSpec(arr.shape, lambda b, _nd=nd: (0,) * _nd)

    out = pl.pallas_call(
        _encoder_kernel,
        grid=(B,),
        in_specs=[pl.BlockSpec((1, S, D), lambda b: (b, 0, 0)),   # x
                  pl.BlockSpec((1, 1, S), lambda b: (b, 0, 0))]   # mask bias
                 + [full_spec(w) for w in weights],               # resident weights
        out_specs=pl.BlockSpec((1, S, D), lambda b: (b, 0, 0)),
        out_shape=jax.ShapeDtypeStruct((B, S, D), x.dtype),
        compiler_params=pltpu.CompilerParams(
            dimension_semantics=("parallel",)),                   # v7x: 1 batch / TC
    )(x, maskb, *weights)
    return out


# ---------------------------------------------------------------------------
# Deterministic parameter init (natural / PyTorch-like layout) + kernel packing
# ---------------------------------------------------------------------------
def init_params(key):
    def dense(k, fi, fo):
        kw, kb = jax.random.split(k)
        w = jax.random.normal(kw, (fi, fo), jnp.float32) * 0.1
        b = jax.random.normal(kb, (fo,), jnp.float32) * 0.1
        return w, b

    names = ["wq", "bq", "wk", "bk", "wv", "bv", "wo", "bo",
             "w1", "b1", "w2", "b2"]
    acc = {n: [] for n in names}
    ln = {n: [] for n in ["ln1_g", "ln1_b", "ln2_g", "ln2_b"]}
    for _ in range(NUM_LAYERS):
        key, k1, k2, k3, k4, k5, k6, k7, k8 = jax.random.split(key, 9)
        for nm, kk, fi, fo in [("wq", k1, D_MODEL, D_MODEL),
                               ("wk", k2, D_MODEL, D_MODEL),
                               ("wv", k3, D_MODEL, D_MODEL),
                               ("wo", k4, D_MODEL, D_MODEL),
                               ("w1", k5, D_MODEL, D_FF),
                               ("w2", k6, D_FF, D_MODEL)]:
            w, b = dense(kk, fi, fo)
            acc[nm].append(w)
            acc["b" + nm[1:]].append(b)
        # slightly perturbed LN affine params (exercise the gamma/beta paths)
        ga1, be1 = jax.random.split(k7)
        ga2, be2 = jax.random.split(k8)
        ln["ln1_g"].append(1.0 + 0.1 * jax.random.normal(ga1, (D_MODEL,), jnp.float32))
        ln["ln1_b"].append(0.1 * jax.random.normal(be1, (D_MODEL,), jnp.float32))
        ln["ln2_g"].append(1.0 + 0.1 * jax.random.normal(ga2, (D_MODEL,), jnp.float32))
        ln["ln2_b"].append(0.1 * jax.random.normal(be2, (D_MODEL,), jnp.float32))

    key, kf1, kf2 = jax.random.split(key, 3)
    params = {n: jnp.stack(v) for n, v in {**acc, **ln}.items()}
    params["lnf_g"] = 1.0 + 0.1 * jax.random.normal(kf1, (D_MODEL,), jnp.float32)
    params["lnf_b"] = 0.1 * jax.random.normal(kf2, (D_MODEL,), jnp.float32)
    return params


def pack_params(p):
    """One-time repack for the kernel: per-head fused QKV with the 1/sqrt(DH)
    scale folded into the Q columns, and head-split output projection."""
    H, DH, D = NUM_HEADS, D_HEAD, D_MODEL
    scale = 1.0 / math.sqrt(DH)
    wqkv, bqkv, wo_h = [], [], []
    for l in range(NUM_LAYERS):
        wq, bq = p["wq"][l] * scale, p["bq"][l] * scale   # fold softmax scale
        wk, bk = p["wk"][l], p["bk"][l]
        wv, bv = p["wv"][l], p["bv"][l]
        per_w, per_b = [], []
        for h in range(H):
            sl = slice(h * DH, (h + 1) * DH)
            per_w.append(jnp.concatenate([wq[:, sl], wk[:, sl], wv[:, sl]], axis=1))
            per_b.append(jnp.concatenate([bq[sl], bk[sl], bv[sl]])[None, :])
        wqkv.append(jnp.stack(per_w))                      # (H, D, 3*DH)
        bqkv.append(jnp.stack(per_b))                      # (H, 1, 3*DH)
        wo_h.append(p["wo"][l].reshape(H, DH, D))          # (H, DH, D)
    return dict(
        wqkv=jnp.stack(wqkv), bqkv=jnp.stack(bqkv),
        wo=jnp.stack(wo_h), bo=p["bo"][:, None, :],
        w1=p["w1"], b1=p["b1"][:, None, :],
        w2=p["w2"], b2=p["b2"][:, None, :],
        ln1_g=p["ln1_g"][:, None, :], ln1_b=p["ln1_b"][:, None, :],
        ln2_g=p["ln2_g"][:, None, :], ln2_b=p["ln2_b"][:, None, :],
        lnf_g=p["lnf_g"][None, :], lnf_b=p["lnf_b"][None, :],
    )


# ---------------------------------------------------------------------------
# Pure-JAX reference (mirrors the PyTorch module) for the correctness check
# ---------------------------------------------------------------------------
def encoder_reference(p, x, mask):
    B, S, D = x.shape
    H, DH = NUM_HEADS, D_HEAD

    def ln(h, g, b):
        mu = jnp.mean(h, axis=-1, keepdims=True)
        var = jnp.mean((h - mu) ** 2, axis=-1, keepdims=True)
        return (h - mu) * jax.lax.rsqrt(var + LN_EPS) * g + b

    h = x
    for l in range(NUM_LAYERS):
        q = h @ p["wq"][l] + p["bq"][l]
        k = h @ p["wk"][l] + p["bk"][l]
        v = h @ p["wv"][l] + p["bv"][l]

        def split(t):
            return t.reshape(B, S, H, DH).transpose(0, 2, 1, 3)

        qh, kh, vh = split(q), split(k), split(v)
        s = jnp.einsum("bhqd,bhkd->bhqk", qh, kh) / math.sqrt(DH)
        s = jnp.where(mask[:, None, :, :] > 0, s, jnp.float32(-1e9))
        pr = jax.nn.softmax(s, axis=-1)
        ctx = jnp.einsum("bhqk,bhkd->bhqd", pr, vh).transpose(0, 2, 1, 3)
        attn = ctx.reshape(B, S, D) @ p["wo"][l] + p["bo"][l]
        h = ln(h + attn, p["ln1_g"][l], p["ln1_b"][l])
        ff = jnp.maximum(h @ p["w1"][l] + p["b1"][l], 0.0) @ p["w2"][l] + p["b2"][l]
        h = ln(h + ff, p["ln2_g"][l], p["ln2_b"][l])
    return ln(h, p["lnf_g"], p["lnf_b"])


if __name__ == "__main__":
    key = jax.random.PRNGKey(0)
    kx, kp = jax.random.split(key)

    B, S = 2, 8
    x = jax.random.normal(kx, (B, S, D_MODEL), dtype=jnp.float32)
    # key-padding style mask: last 2 key positions of every batch are masked out
    mask = jnp.ones((B, 1, S), dtype=jnp.float32).at[:, :, -2:].set(0.0)

    natural = init_params(kp)
    packed = pack_params(natural)    # one-time constant fold (not a per-call op)

    out = jax.jit(encoder_forward)(packed, x, mask)
    jax.block_until_ready(out)
    assert out.shape == (B, S, D_MODEL) and out.dtype == jnp.float32

    ref = encoder_reference(natural, x, mask)
    err = float(jnp.max(jnp.abs(out - ref)))
    # Tolerance relaxed vs. 1e-4 because of the EUP approx reciprocal in softmax.
    assert jnp.allclose(out, ref, atol=2e-3, rtol=2e-3), err
    print("KERNEL_OK")
</pallas_src>

<mosaic_0001>
module attributes {stable_mosaic.version = 11 : i64} {
  func.func @_encoder_kernel(%arg0: i32, %arg1: memref<1x8x32xf32, #tpu.memory_space<vmem>>, %arg2: memref<1x1x8xf32, #tpu.memory_space<vmem>>, %arg3: memref<2x4x32x24xf32, #tpu.memory_space<vmem>>, %arg4: memref<2x4x1x24xf32, #tpu.memory_space<vmem>>, %arg5: memref<2x4x8x32xf32, #tpu.memory_space<vmem>>, %arg6: memref<2x1x32xf32, #tpu.memory_space<vmem>>, %arg7: memref<2x32x64xf32, #tpu.memory_space<vmem>>, %arg8: memref<2x1x64xf32, #tpu.memory_space<vmem>>, %arg9: memref<2x64x32xf32, #tpu.memory_space<vmem>>, %arg10: memref<2x1x32xf32, #tpu.memory_space<vmem>>, %arg11: memref<2x1x32xf32, #tpu.memory_space<vmem>>, %arg12: memref<2x1x32xf32, #tpu.memory_space<vmem>>, %arg13: memref<2x1x32xf32, #tpu.memory_space<vmem>>, %arg14: memref<2x1x32xf32, #tpu.memory_space<vmem>>, %arg15: memref<1x32xf32, #tpu.memory_space<vmem>>, %arg16: memref<1x32xf32, #tpu.memory_space<vmem>>, %arg17: memref<1x8x32xf32, #tpu.memory_space<vmem>>) attributes {dimension_semantics = [#tpu.dimension_semantics<parallel>], iteration_bounds = array<i64: 2>, scalar_prefetch = 0 : i64, scratch_operands = 0 : i64, tpu.core_type = #tpu.core_type<tc>, window_params = [{transform_indices = @transform_0, window_bounds = array<i64: 1, 8, 32>}, {transform_indices = @transform_1, window_bounds = array<i64: 1, 1, 8>}, {pipeline_mode = #tpu.pipeline_mode<synchronous>, transform_indices = @transform_2, window_bounds = array<i64: 2, 4, 32, 24>}, {pipeline_mode = #tpu.pipeline_mode<synchronous>, transform_indices = @transform_3, window_bounds = array<i64: 2, 4, 1, 24>}, {pipeline_mode = #tpu.pipeline_mode<synchronous>, transform_indices = @transform_4, window_bounds = array<i64: 2, 4, 8, 32>}, {pipeline_mode = #tpu.pipeline_mode<synchronous>, transform_indices = @transform_5, window_bounds = array<i64: 2, 1, 32>}, {pipeline_mode = #tpu.pipeline_mode<synchronous>, transform_indices = @transform_6, window_bounds = array<i64: 2, 32, 64>}, {pipeline_mode = #tpu.pipeline_mode<synchronous>, transform_indices = @transform_7, window_bounds = array<i64: 2, 1, 64>}, {pipeline_mode = #tpu.pipeline_mode<synchronous>, transform_indices = @transform_8, window_bounds = array<i64: 2, 64, 32>}, {pipeline_mode = #tpu.pipeline_mode<synchronous>, transform_indices = @transform_9, window_bounds = array<i64: 2, 1, 32>}, {pipeline_mode = #tpu.pipeline_mode<synchronous>, transform_indices = @transform_10, window_bounds = array<i64: 2, 1, 32>}, {pipeline_mode = #tpu.pipeline_mode<synchronous>, transform_indices = @transform_11, window_bounds = array<i64: 2, 1, 32>}, {pipeline_mode = #tpu.pipeline_mode<synchronous>, transform_indices = @transform_12, window_bounds = array<i64: 2, 1, 32>}, {pipeline_mode = #tpu.pipeline_mode<synchronous>, transform_indices = @transform_13, window_bounds = array<i64: 2, 1, 32>}, {pipeline_mode = #tpu.pipeline_mode<synchronous>, transform_indices = @transform_14, window_bounds = array<i64: 1, 32>}, {pipeline_mode = #tpu.pipeline_mode<synchronous>, transform_indices = @transform_15, window_bounds = array<i64: 1, 32>}, {transform_indices = @transform_16, window_bounds = array<i64: 1, 8, 32>}]} {
    %c0 = arith.constant 0 : index
    %c0_0 = arith.constant 0 : index
    %c0_1 = arith.constant 0 : index
    %0 = vector.load %arg1[%c0, %c0_0, %c0_1] : memref<1x8x32xf32, #tpu.memory_space<vmem>>, vector<1x8x32xf32>
    %1 = vector.shape_cast %0 : vector<1x8x32xf32> to vector<8x32xf32>
    %c0_2 = arith.constant 0 : index
    %c0_3 = arith.constant 0 : index
    %c0_4 = arith.constant 0 : index
    %2 = vector.load %arg2[%c0_2, %c0_3, %c0_4] : memref<1x1x8xf32, #tpu.memory_space<vmem>>, vector<1x1x8xf32>
    %3 = vector.shape_cast %1 : vector<8x32xf32> to vector<1x8x32xf32>
    %4 = vector.broadcast %3 : vector<1x8x32xf32> to vector<4x8x32xf32>
    %c0_5 = arith.constant 0 : index
    %c0_6 = arith.constant 0 : index
    %c0_7 = arith.constant 0 : index
    %c0_8 = arith.constant 0 : index
    %5 = vector.load %arg3[%c0_5, %c0_6, %c0_7, %c0_8] : memref<2x4x32x24xf32, #tpu.memory_space<vmem>>, vector<1x4x32x24xf32>
    %6 = vector.shape_cast %5 : vector<1x4x32x24xf32> to vector<4x32x24xf32>
    "tpu.trace_start"() <{level = 10 : i32, message = "hsd,hde->hse"}> : () -> ()
    %cst = arith.constant dense<0.000000e+00> : vector<4x8x24xf32>
    %7 = tpu.matmul %4, %6, %cst {dimension_numbers = #tpu.dot_dimension_numbers<[2], [1], [1], [2], [0, 0, 0, 1, 1, 2], [0], [0]>} : vector<4x8x32xf32>, vector<4x32x24xf32>, vector<4x8x24xf32> -> vector<4x8x24xf32>
    "tpu.trace_stop"() : () -> ()
    %c0_9 = arith.constant 0 : index
    %c0_10 = arith.constant 0 : index
    %c0_11 = arith.constant 0 : index
    %c0_12 = arith.constant 0 : index
    %8 = vector.load %arg4[%c0_9, %c0_10, %c0_11, %c0_12] : memref<2x4x1x24xf32, #tpu.memory_space<vmem>>, vector<1x4x1x24xf32>
    %9 = vector.shape_cast %8 : vector<1x4x1x24xf32> to vector<4x1x24xf32>
    %10 = vector.broadcast %9 : vector<4x1x24xf32> to vector<4x8x24xf32>
    %11 = arith.addf %7, %10 : vector<4x8x24xf32>
    %12 = vector.extract_strided_slice %11 {offsets = [0, 0, 0], sizes = [4, 8, 8], strides = [1, 1, 1]} : vector<4x8x24xf32> to vector<4x8x8xf32>
    %13 = vector.extract_strided_slice %11 {offsets = [0, 0, 8], sizes = [4, 8, 8], strides = [1, 1, 1]} : vector<4x8x24xf32> to vector<4x8x8xf32>
    %14 = vector.extract_strided_slice %11 {offsets = [0, 0, 16], sizes = [4, 8, 8], strides = [1, 1, 1]} : vector<4x8x24xf32> to vector<4x8x8xf32>
    "tpu.trace_start"() <{level = 10 : i32, message = "hqd,hkd->hqk"}> : () -> ()
    %cst_13 = arith.constant dense<0.000000e+00> : vector<4x8x8xf32>
    %15 = tpu.matmul %12, %13, %cst_13 {dimension_numbers = #tpu.dot_dimension_numbers<[2], [2], [1], [1], [0, 0, 0, 1, 1, 1], [0], [0]>} : vector<4x8x8xf32>, vector<4x8x8xf32>, vector<4x8x8xf32> -> vector<4x8x8xf32>
    "tpu.trace_stop"() : () -> ()
    %16 = vector.broadcast %2 : vector<1x1x8xf32> to vector<4x8x8xf32>
    %17 = arith.addf %15, %16 : vector<4x8x8xf32>
    %cst_14 = arith.constant dense<0xFF800000> : vector<4x8xf32>
    %18 = vector.multi_reduction <maximumf>, %17, %cst_14 [2] : vector<4x8x8xf32> to vector<4x8xf32>
    %19 = vector.shape_cast %18 : vector<4x8xf32> to vector<4x8x1xf32>
    %20 = vector.broadcast %19 : vector<4x8x1xf32> to vector<4x8x8xf32>
    %21 = arith.subf %17, %20 : vector<4x8x8xf32>
    %22 = math.exp %21 : vector<4x8x8xf32>
    %cst_15 = arith.constant dense<0.000000e+00> : vector<4x8xf32>
    %23 = vector.multi_reduction <add>, %22, %cst_15 [2] : vector<4x8x8xf32> to vector<4x8xf32>
    %24 = vector.shape_cast %23 : vector<4x8xf32> to vector<4x8x1xf32>
    %25 = tpu.reciprocal %24 {approx = true} : vector<4x8x1xf32> -> vector<4x8x1xf32>
    %26 = vector.broadcast %25 : vector<4x8x1xf32> to vector<4x8x8xf32>
    %27 = arith.mulf %22, %26 : vector<4x8x8xf32>
    "tpu.trace_start"() <{level = 10 : i32, message = "hqk,hkd->hqd"}> : () -> ()
    %cst_16 = arith.constant dense<0.000000e+00> : vector<4x8x8xf32>
    %28 = tpu.matmul %27, %14, %cst_16 {dimension_numbers = #tpu.dot_dimension_numbers<[2], [1], [1], [2], [0, 0, 0, 1, 1, 2], [0], [0]>} : vector<4x8x8xf32>, vector<4x8x8xf32>, vector<4x8x8xf32> -> vector<4x8x8xf32>
    "tpu.trace_stop"() : () -> ()
    %c0_17 = arith.constant 0 : index
    %c0_18 = arith.constant 0 : index
    %c0_19 = arith.constant 0 : index
    %c0_20 = arith.constant 0 : index
    %29 = vector.load %arg5[%c0_17, %c0_18, %c0_19, %c0_20] : memref<2x4x8x32xf32, #tpu.memory_space<vmem>>, vector<1x4x8x32xf32>
    %30 = vector.shape_cast %29 : vector<1x4x8x32xf32> to vector<4x8x32xf32>
    "tpu.trace_start"() <{level = 10 : i32, message = "hqd,hde->hqe"}> : () -> ()
    %cst_21 = arith.constant dense<0.000000e+00> : vector<4x8x32xf32>
    %31 = tpu.matmul %28, %30, %cst_21 {dimension_numbers = #tpu.dot_dimension_numbers<[2], [1], [1], [2], [0, 0, 0, 1, 1, 2], [0], [0]>} : vector<4x8x8xf32>, vector<4x8x32xf32>, vector<4x8x32xf32> -> vector<4x8x32xf32>
    "tpu.trace_stop"() : () -> ()
    %cst_22 = arith.constant dense<0.000000e+00> : vector<8x32xf32>
    %32 = vector.multi_reduction <add>, %31, %cst_22 [0] : vector<4x8x32xf32> to vector<8x32xf32>
    %c0_23 = arith.constant 0 : index
    %c0_24 = arith.constant 0 : index
    %c0_25 = arith.constant 0 : index
    %33 = vector.load %arg6[%c0_23, %c0_24, %c0_25] : memref<2x1x32xf32, #tpu.memory_space<vmem>>, vector<1x1x32xf32>
    %34 = vector.shape_cast %33 : vector<1x1x32xf32> to vector<1x32xf32>
    %35 = vector.broadcast %34 : vector<1x32xf32> to vector<8x32xf32>
    %36 = arith.addf %32, %35 : vector<8x32xf32>
    %37 = arith.addf %1, %36 : vector<8x32xf32>
    %c0_26 = arith.constant 0 : index
    %c0_27 = arith.constant 0 : index
    %c0_28 = arith.constant 0 : index
    %38 = vector.load %arg11[%c0_26, %c0_27, %c0_28] : memref<2x1x32xf32, #tpu.memory_space<vmem>>, vector<1x1x32xf32>
    %39 = vector.shape_cast %38 : vector<1x1x32xf32> to vector<1x32xf32>
    %c0_29 = arith.constant 0 : index
    %c0_30 = arith.constant 0 : index
    %c0_31 = arith.constant 0 : index
    %40 = vector.load %arg12[%c0_29, %c0_30, %c0_31] : memref<2x1x32xf32, #tpu.memory_space<vmem>>, vector<1x1x32xf32>
    %41 = vector.shape_cast %40 : vector<1x1x32xf32> to vector<1x32xf32>
    %cst_32 = arith.constant dense<0.000000e+00> : vector<8xf32>
    %42 = vector.multi_reduction <add>, %37, %cst_32 [1] : vector<8x32xf32> to vector<8xf32>
    %43 = vector.shape_cast %42 : vector<8xf32> to vector<8x1xf32>
    %cst_33 = arith.constant 3.200000e+01 : f32
    %44 = vector.broadcast %cst_33 : f32 to vector<8x1xf32>
    %45 = arith.divf %43, %44 : vector<8x1xf32>
    %46 = vector.broadcast %45 : vector<8x1xf32> to vector<8x32xf32>
    %47 = arith.subf %37, %46 : vector<8x32xf32>
    %48 = arith.mulf %47, %47 : vector<8x32xf32>
    %cst_34 = arith.constant dense<0.000000e+00> : vector<8xf32>
    %49 = vector.multi_reduction <add>, %48, %cst_34 [1] : vector<8x32xf32> to vector<8xf32>
    %50 = vector.shape_cast %49 : vector<8xf32> to vector<8x1xf32>
    %cst_35 = arith.constant 3.200000e+01 : f32
    %51 = vector.broadcast %cst_35 : f32 to vector<8x1xf32>
    %52 = arith.divf %50, %51 : vector<8x1xf32>
    %53 = vector.broadcast %45 : vector<8x1xf32> to vector<8x32xf32>
    %54 = arith.subf %37, %53 : vector<8x32xf32>
    %cst_36 = arith.constant 9.99999974E-6 : f32
    %55 = vector.broadcast %cst_36 : f32 to vector<8x1xf32>
    %56 = arith.addf %52, %55 : vector<8x1xf32>
    %57 = math.rsqrt %56 : vector<8x1xf32>
    %58 = vector.broadcast %57 : vector<8x1xf32> to vector<8x32xf32>
    %59 = arith.mulf %54, %58 : vector<8x32xf32>
    %60 = vector.broadcast %39 : vector<1x32xf32> to vector<8x32xf32>
    %61 = arith.mulf %59, %60 : vector<8x32xf32>
    %62 = vector.broadcast %41 : vector<1x32xf32> to vector<8x32xf32>
    %63 = arith.addf %61, %62 : vector<8x32xf32>
    %c0_37 = arith.constant 0 : index
    %c0_38 = arith.constant 0 : index
    %c0_39 = arith.constant 0 : index
    %64 = vector.load %arg7[%c0_37, %c0_38, %c0_39] : memref<2x32x64xf32, #tpu.memory_space<vmem>>, vector<1x32x64xf32>
    %65 = vector.shape_cast %64 : vector<1x32x64xf32> to vector<32x64xf32>
    %cst_40 = arith.constant dense<0.000000e+00> : vector<8x64xf32>
    %66 = tpu.matmul %63, %65, %cst_40 {dimension_numbers = #tpu.dot_dimension_numbers<[1], [0], [0], [1], [0, 0, 1, 1], [], []>} : vector<8x32xf32>, vector<32x64xf32>, vector<8x64xf32> -> vector<8x64xf32>
    %c0_41 = arith.constant 0 : index
    %c0_42 = arith.constant 0 : index
    %c0_43 = arith.constant 0 : index
    %67 = vector.load %arg8[%c0_41, %c0_42, %c0_43] : memref<2x1x64xf32, #tpu.memory_space<vmem>>, vector<1x1x64xf32>
    %68 = vector.shape_cast %67 : vector<1x1x64xf32> to vector<1x64xf32>
    %69 = vector.broadcast %68 : vector<1x64xf32> to vector<8x64xf32>
    %70 = arith.addf %66, %69 : vector<8x64xf32>
    %cst_44 = arith.constant 0.000000e+00 : f32
    %71 = vector.broadcast %cst_44 : f32 to vector<8x64xf32>
    %72 = arith.maximumf %70, %71 : vector<8x64xf32>
    %c0_45 = arith.constant 0 : index
    %c0_46 = arith.constant 0 : index
    %c0_47 = arith.constant 0 : index
    %73 = vector.load %arg9[%c0_45, %c0_46, %c0_47] : memref<2x64x32xf32, #tpu.memory_space<vmem>>, vector<1x64x32xf32>
    %74 = vector.shape_cast %73 : vector<1x64x32xf32> to vector<64x32xf32>
    %cst_48 = arith.constant dense<0.000000e+00> : vector<8x32xf32>
    %75 = tpu.matmul %72, %74, %cst_48 {dimension_numbers = #tpu.dot_dimension_numbers<[1], [0], [0], [1], [0, 0, 1, 1], [], []>} : vector<8x64xf32>, vector<64x32xf32>, vector<8x32xf32> -> vector<8x32xf32>
    %c0_49 = arith.constant 0 : index
    %c0_50 = arith.constant 0 : index
    %c0_51 = arith.constant 0 : index
    %76 = vector.load %arg10[%c0_49, %c0_50, %c0_51] : memref<2x1x32xf32, #tpu.memory_space<vmem>>, vector<1x1x32xf32>
    %77 = vector.shape_cast %76 : vector<1x1x32xf32> to vector<1x32xf32>
    %78 = vector.broadcast %77 : vector<1x32xf32> to vector<8x32xf32>
    %79 = arith.addf %75, %78 : vector<8x32xf32>
    %80 = arith.addf %63, %79 : vector<8x32xf32>
    %c0_52 = arith.constant 0 : index
    %c0_53 = arith.constant 0 : index
    %c0_54 = arith.constant 0 : index
    %81 = vector.load %arg13[%c0_52, %c0_53, %c0_54] : memref<2x1x32xf32, #tpu.memory_space<vmem>>, vector<1x1x32xf32>
    %82 = vector.shape_cast %81 : vector<1x1x32xf32> to vector<1x32xf32>
    %c0_55 = arith.constant 0 : index
    %c0_56 = arith.constant 0 : index
    %c0_57 = arith.constant 0 : index
    %83 = vector.load %arg14[%c0_55, %c0_56, %c0_57] : memref<2x1x32xf32, #tpu.memory_space<vmem>>, vector<1x1x32xf32>
    %84 = vector.shape_cast %83 : vector<1x1x32xf32> to vector<1x32xf32>
    %cst_58 = arith.constant dense<0.000000e+00> : vector<8xf32>
    %85 = vector.multi_reduction <add>, %80, %cst_58 [1] : vector<8x32xf32> to vector<8xf32>
    %86 = vector.shape_cast %85 : vector<8xf32> to vector<8x1xf32>
    %cst_59 = arith.constant 3.200000e+01 : f32
    %87 = vector.broadcast %cst_59 : f32 to vector<8x1xf32>
    %88 = arith.divf %86, %87 : vector<8x1xf32>
    %89 = vector.broadcast %88 : vector<8x1xf32> to vector<8x32xf32>
    %90 = arith.subf %80, %89 : vector<8x32xf32>
    %91 = arith.mulf %90, %90 : vector<8x32xf32>
    %cst_60 = arith.constant dense<0.000000e+00> : vector<8xf32>
    %92 = vector.multi_reduction <add>, %91, %cst_60 [1] : vector<8x32xf32> to vector<8xf32>
    %93 = vector.shape_cast %92 : vector<8xf32> to vector<8x1xf32>
    %cst_61 = arith.constant 3.200000e+01 : f32
    %94 = vector.broadcast %cst_61 : f32 to vector<8x1xf32>
    %95 = arith.divf %93, %94 : vector<8x1xf32>
    %96 = vector.broadcast %88 : vector<8x1xf32> to vector<8x32xf32>
    %97 = arith.subf %80, %96 : vector<8x32xf32>
    %cst_62 = arith.constant 9.99999974E-6 : f32
    %98 = vector.broadcast %cst_62 : f32 to vector<8x1xf32>
    %99 = arith.addf %95, %98 : vector<8x1xf32>
    %100 = math.rsqrt %99 : vector<8x1xf32>
    %101 = vector.broadcast %100 : vector<8x1xf32> to vector<8x32xf32>
    %102 = arith.mulf %97, %101 : vector<8x32xf32>
    %103 = vector.broadcast %82 : vector<1x32xf32> to vector<8x32xf32>
    %104 = arith.mulf %102, %103 : vector<8x32xf32>
    %105 = vector.broadcast %84 : vector<1x32xf32> to vector<8x32xf32>
    %106 = arith.addf %104, %105 : vector<8x32xf32>
    %107 = vector.shape_cast %106 : vector<8x32xf32> to vector<1x8x32xf32>
    %108 = vector.broadcast %107 : vector<1x8x32xf32> to vector<4x8x32xf32>
    %c1 = arith.constant 1 : index
    %c0_63 = arith.constant 0 : index
    %c0_64 = arith.constant 0 : index
    %c0_65 = arith.constant 0 : index
    %109 = vector.load %arg3[%c1, %c0_63, %c0_64, %c0_65] : memref<2x4x32x24xf32, #tpu.memory_space<vmem>>, vector<1x4x32x24xf32>
    %110 = vector.shape_cast %109 : vector<1x4x32x24xf32> to vector<4x32x24xf32>
    "tpu.trace_start"() <{level = 10 : i32, message = "hsd,hde->hse"}> : () -> ()
    %cst_66 = arith.constant dense<0.000000e+00> : vector<4x8x24xf32>
    %111 = tpu.matmul %108, %110, %cst_66 {dimension_numbers = #tpu.dot_dimension_numbers<[2], [1], [1], [2], [0, 0, 0, 1, 1, 2], [0], [0]>} : vector<4x8x32xf32>, vector<4x32x24xf32>, vector<4x8x24xf32> -> vector<4x8x24xf32>
    "tpu.trace_stop"() : () -> ()
    %c1_67 = arith.constant 1 : index
    %c0_68 = arith.constant 0 : index
    %c0_69 = arith.constant 0 : index
    %c0_70 = arith.constant 0 : index
    %112 = vector.load %arg4[%c1_67, %c0_68, %c0_69, %c0_70] : memref<2x4x1x24xf32, #tpu.memory_space<vmem>>, vector<1x4x1x24xf32>
    %113 = vector.shape_cast %112 : vector<1x4x1x24xf32> to vector<4x1x24xf32>
    %114 = vector.broadcast %113 : vector<4x1x24xf32> to vector<4x8x24xf32>
    %115 = arith.addf %111, %114 : vector<4x8x24xf32>
    %116 = vector.extract_strided_slice %115 {offsets = [0, 0, 0], sizes = [4, 8, 8], strides = [1, 1, 1]} : vector<4x8x24xf32> to vector<4x8x8xf32>
    %117 = vector.extract_strided_slice %115 {offsets = [0, 0, 8], sizes = [4, 8, 8], strides = [1, 1, 1]} : vector<4x8x24xf32> to vector<4x8x8xf32>
    %118 = vector.extract_strided_slice %115 {offsets = [0, 0, 16], sizes = [4, 8, 8], strides = [1, 1, 1]} : vector<4x8x24xf32> to vector<4x8x8xf32>
    "tpu.trace_start"() <{level = 10 : i32, message = "hqd,hkd->hqk"}> : () -> ()
    %cst_71 = arith.constant dense<0.000000e+00> : vector<4x8x8xf32>
    %119 = tpu.matmul %116, %117, %cst_71 {dimension_numbers = #tpu.dot_dimension_numbers<[2], [2], [1], [1], [0, 0, 0, 1, 1, 1], [0], [0]>} : vector<4x8x8xf32>, vector<4x8x8xf32>, vector<4x8x8xf32> -> vector<4x8x8xf32>
    "tpu.trace_stop"() : () -> ()
    %120 = vector.broadcast %2 : vector<1x1x8xf32> to vector<4x8x8xf32>
    %121 = arith.addf %119, %120 : vector<4x8x8xf32>
    %cst_72 = arith.constant dense<0xFF800000> : vector<4x8xf32>
    %122 = vector.multi_reduction <maximumf>, %121, %cst_72 [2] : vector<4x8x8xf32> to vector<4x8xf32>
    %123 = vector.shape_cast %122 : vector<4x8xf32> to vector<4x8x1xf32>
    %124 = vector.broadcast %123 : vector<4x8x1xf32> to vector<4x8x8xf32>
    %125 = arith.subf %121, %124 : vector<4x8x8xf32>
    %126 = math.exp %125 : vector<4x8x8xf32>
    %cst_73 = arith.constant dense<0.000000e+00> : vector<4x8xf32>
    %127 = vector.multi_reduction <add>, %126, %cst_73 [2] : vector<4x8x8xf32> to vector<4x8xf32>
    %128 = vector.shape_cast %127 : vector<4x8xf32> to vector<4x8x1xf32>
    %129 = tpu.reciprocal %128 {approx = true} : vector<4x8x1xf32> -> vector<4x8x1xf32>
    %130 = vector.broadcast %129 : vector<4x8x1xf32> to vector<4x8x8xf32>
    %131 = arith.mulf %126, %130 : vector<4x8x8xf32>
    "tpu.trace_start"() <{level = 10 : i32, message = "hqk,hkd->hqd"}> : () -> ()
    %cst_74 = arith.constant dense<0.000000e+00> : vector<4x8x8xf32>
    %132 = tpu.matmul %131, %118, %cst_74 {dimension_numbers = #tpu.dot_dimension_numbers<[2], [1], [1], [2], [0, 0, 0, 1, 1, 2], [0], [0]>} : vector<4x8x8xf32>, vector<4x8x8xf32>, vector<4x8x8xf32> -> vector<4x8x8xf32>
    "tpu.trace_stop"() : () -> ()
    %c1_75 = arith.constant 1 : index
    %c0_76 = arith.constant 0 : index
    %c0_77 = arith.constant 0 : index
    %c0_78 = arith.constant 0 : index
    %133 = vector.load %arg5[%c1_75, %c0_76, %c0_77, %c0_78] : memref<2x4x8x32xf32, #tpu.memory_space<vmem>>, vector<1x4x8x32xf32>
    %134 = vector.shape_cast %133 : vector<1x4x8x32xf32> to vector<4x8x32xf32>
    "tpu.trace_start"() <{level = 10 : i32, message = "hqd,hde->hqe"}> : () -> ()
    %cst_79 = arith.constant dense<0.000000e+00> : vector<4x8x32xf32>
    %135 = tpu.matmul %132, %134, %cst_79 {dimension_numbers = #tpu.dot_dimension_numbers<[2], [1], [1], [2], [0, 0, 0, 1, 1, 2], [0], [0]>} : vector<4x8x8xf32>, vector<4x8x32xf32>, vector<4x8x32xf32> -> vector<4x8x32xf32>
    "tpu.trace_stop"() : () -> ()
    %cst_80 = arith.constant dense<0.000000e+00> : vector<8x32xf32>
    %136 = vector.multi_reduction <add>, %135, %cst_80 [0] : vector<4x8x32xf32> to vector<8x32xf32>
    %c1_81 = arith.constant 1 : index
    %c0_82 = arith.constant 0 : index
    %c0_83 = arith.constant 0 : index
    %137 = vector.load %arg6[%c1_81, %c0_82, %c0_83] : memref<2x1x32xf32, #tpu.memory_space<vmem>>, vector<1x1x32xf32>
    %138 = vector.shape_cast %137 : vector<1x1x32xf32> to vector<1x32xf32>
    %139 = vector.broadcast %138 : vector<1x32xf32> to vector<8x32xf32>
    %140 = arith.addf %136, %139 : vector<8x32xf32>
    %141 = arith.addf %106, %140 : vector<8x32xf32>
    %c1_84 = arith.constant 1 : index
    %c0_85 = arith.constant 0 : index
    %c0_86 = arith.constant 0 : index
    %142 = vector.load %arg11[%c1_84, %c0_85, %c0_86] : memref<2x1x32xf32, #tpu.memory_space<vmem>>, vector<1x1x32xf32>
    %143 = vector.shape_cast %142 : vector<1x1x32xf32> to vector<1x32xf32>
    %c1_87 = arith.constant 1 : index
    %c0_88 = arith.constant 0 : index
    %c0_89 = arith.constant 0 : index
    %144 = vector.load %arg12[%c1_87, %c0_88, %c0_89] : memref<2x1x32xf32, #tpu.memory_space<vmem>>, vector<1x1x32xf32>
    %145 = vector.shape_cast %144 : vector<1x1x32xf32> to vector<1x32xf32>
    %cst_90 = arith.constant dense<0.000000e+00> : vector<8xf32>
    %146 = vector.multi_reduction <add>, %141, %cst_90 [1] : vector<8x32xf32> to vector<8xf32>
    %147 = vector.shape_cast %146 : vector<8xf32> to vector<8x1xf32>
    %cst_91 = arith.constant 3.200000e+01 : f32
    %148 = vector.broadcast %cst_91 : f32 to vector<8x1xf32>
    %149 = arith.divf %147, %148 : vector<8x1xf32>
    %150 = vector.broadcast %149 : vector<8x1xf32> to vector<8x32xf32>
    %151 = arith.subf %141, %150 : vector<8x32xf32>
    %152 = arith.mulf %151, %151 : vector<8x32xf32>
    %cst_92 = arith.constant dense<0.000000e+00> : vector<8xf32>
    %153 = vector.multi_reduction <add>, %152, %cst_92 [1] : vector<8x32xf32> to vector<8xf32>
    %154 = vector.shape_cast %153 : vector<8xf32> to vector<8x1xf32>
    %cst_93 = arith.constant 3.200000e+01 : f32
    %155 = vector.broadcast %cst_93 : f32 to vector<8x1xf32>
    %156 = arith.divf %154, %155 : vector<8x1xf32>
    %157 = vector.broadcast %149 : vector<8x1xf32> to vector<8x32xf32>
    %158 = arith.subf %141, %157 : vector<8x32xf32>
    %cst_94 = arith.constant 9.99999974E-6 : f32
    %159 = vector.broadcast %cst_94 : f32 to vector<8x1xf32>
    %160 = arith.addf %156, %159 : vector<8x1xf32>
    %161 = math.rsqrt %160 : vector<8x1xf32>
    %162 = vector.broadcast %161 : vector<8x1xf32> to vector<8x32xf32>
    %163 = arith.mulf %158, %162 : vector<8x32xf32>
    %164 = vector.broadcast %143 : vector<1x32xf32> to vector<8x32xf32>
    %165 = arith.mulf %163, %164 : vector<8x32xf32>
    %166 = vector.broadcast %145 : vector<1x32xf32> to vector<8x32xf32>
    %167 = arith.addf %165, %166 : vector<8x32xf32>
    %c1_95 = arith.constant 1 : index
    %c0_96 = arith.constant 0 : index
    %c0_97 = arith.constant 0 : index
    %168 = vector.load %arg7[%c1_95, %c0_96, %c0_97] : memref<2x32x64xf32, #tpu.memory_space<vmem>>, vector<1x32x64xf32>
    %169 = vector.shape_cast %168 : vector<1x32x64xf32> to vector<32x64xf32>
    %cst_98 = arith.constant dense<0.000000e+00> : vector<8x64xf32>
    %170 = tpu.matmul %167, %169, %cst_98 {dimension_numbers = #tpu.dot_dimension_numbers<[1], [0], [0], [1], [0, 0, 1, 1], [], []>} : vector<8x32xf32>, vector<32x64xf32>, vector<8x64xf32> -> vector<8x64xf32>
    %c1_99 = arith.constant 1 : index
    %c0_100 = arith.constant 0 : index
    %c0_101 = arith.constant 0 : index
    %171 = vector.load %arg8[%c1_99, %c0_100, %c0_101] : memref<2x1x64xf32, #tpu.memory_space<vmem>>, vector<1x1x64xf32>
    %172 = vector.shape_cast %171 : vector<1x1x64xf32> to vector<1x64xf32>
    %173 = vector.broadcast %172 : vector<1x64xf32> to vector<8x64xf32>
    %174 = arith.addf %170, %173 : vector<8x64xf32>
    %cst_102 = arith.constant 0.000000e+00 : f32
    %175 = vector.broadcast %cst_102 : f32 to vector<8x64xf32>
    %176 = arith.maximumf %174, %175 : vector<8x64xf32>
    %c1_103 = arith.constant 1 : index
    %c0_104 = arith.constant 0 : index
    %c0_105 = arith.constant 0 : index
    %177 = vector.load %arg9[%c1_103, %c0_104, %c0_105] : memref<2x64x32xf32, #tpu.memory_space<vmem>>, vector<1x64x32xf32>
    %178 = vector.shape_cast %177 : vector<1x64x32xf32> to vector<64x32xf32>
    %cst_106 = arith.constant dense<0.000000e+00> : vector<8x32xf32>
    %179 = tpu.matmul %176, %178, %cst_106 {dimension_numbers = #tpu.dot_dimension_numbers<[1], [0], [0], [1], [0, 0, 1, 1], [], []>} : vector<8x64xf32>, vector<64x32xf32>, vector<8x32xf32> -> vector<8x32xf32>
    %c1_107 = arith.constant 1 : index
    %c0_108 = arith.constant 0 : index
    %c0_109 = arith.constant 0 : index
    %180 = vector.load %arg10[%c1_107, %c0_108, %c0_109] : memref<2x1x32xf32, #tpu.memory_space<vmem>>, vector<1x1x32xf32>
    %181 = vector.shape_cast %180 : vector<1x1x32xf32> to vector<1x32xf32>
    %182 = vector.broadcast %181 : vector<1x32xf32> to vector<8x32xf32>
    %183 = arith.addf %179, %182 : vector<8x32xf32>
    %184 = arith.addf %167, %183 : vector<8x32xf32>
    %c1_110 = arith.constant 1 : index
    %c0_111 = arith.constant 0 : index
    %c0_112 = arith.constant 0 : index
    %185 = vector.load %arg13[%c1_110, %c0_111, %c0_112] : memref<2x1x32xf32, #tpu.memory_space<vmem>>, vector<1x1x32xf32>
    %186 = vector.shape_cast %185 : vector<1x1x32xf32> to vector<1x32xf32>
    %c1_113 = arith.constant 1 : index
    %c0_114 = arith.constant 0 : index
    %c0_115 = arith.constant 0 : index
    %187 = vector.load %arg14[%c1_113, %c0_114, %c0_115] : memref<2x1x32xf32, #tpu.memory_space<vmem>>, vector<1x1x32xf32>
    %188 = vector.shape_cast %187 : vector<1x1x32xf32> to vector<1x32xf32>
    %cst_116 = arith.constant dense<0.000000e+00> : vector<8xf32>
    %189 = vector.multi_reduction <add>, %184, %cst_116 [1] : vector<8x32xf32> to vector<8xf32>
    %190 = vector.shape_cast %189 : vector<8xf32> to vector<8x1xf32>
    %cst_117 = arith.constant 3.200000e+01 : f32
    %191 = vector.broadcast %cst_117 : f32 to vector<8x1xf32>
    %192 = arith.divf %190, %191 : vector<8x1xf32>
    %193 = vector.broadcast %192 : vector<8x1xf32> to vector<8x32xf32>
    %194 = arith.subf %184, %193 : vector<8x32xf32>
    %195 = arith.mulf %194, %194 : vector<8x32xf32>
    %cst_118 = arith.constant dense<0.000000e+00> : vector<8xf32>
    %196 = vector.multi_reduction <add>, %195, %cst_118 [1] : vector<8x32xf32> to vector<8xf32>
    %197 = vector.shape_cast %196 : vector<8xf32> to vector<8x1xf32>
    %cst_119 = arith.constant 3.200000e+01 : f32
    %198 = vector.broadcast %cst_119 : f32 to vector<8x1xf32>
    %199 = arith.divf %197, %198 : vector<8x1xf32>
    %200 = vector.broadcast %192 : vector<8x1xf32> to vector<8x32xf32>
    %201 = arith.subf %184, %200 : vector<8x32xf32>
    %cst_120 = arith.constant 9.99999974E-6 : f32
    %202 = vector.broadcast %cst_120 : f32 to vector<8x1xf32>
    %203 = arith.addf %199, %202 : vector<8x1xf32>
    %204 = math.rsqrt %203 : vector<8x1xf32>
    %205 = vector.broadcast %204 : vector<8x1xf32> to vector<8x32xf32>
    %206 = arith.mulf %201, %205 : vector<8x32xf32>
    %207 = vector.broadcast %186 : vector<1x32xf32> to vector<8x32xf32>
    %208 = arith.mulf %206, %207 : vector<8x32xf32>
    %209 = vector.broadcast %188 : vector<1x32xf32> to vector<8x32xf32>
    %210 = arith.addf %208, %209 : vector<8x32xf32>
    %c0_121 = arith.constant 0 : index
    %c0_122 = arith.constant 0 : index
    %211 = vector.load %arg15[%c0_121, %c0_122] : memref<1x32xf32, #tpu.memory_space<vmem>>, vector<1x32xf32>
    %c0_123 = arith.constant 0 : index
    %c0_124 = arith.constant 0 : index
    %212 = vector.load %arg16[%c0_123, %c0_124] : memref<1x32xf32, #tpu.memory_space<vmem>>, vector<1x32xf32>
    %cst_125 = arith.constant dense<0.000000e+00> : vector<8xf32>
    %213 = vector.multi_reduction <add>, %210, %cst_125 [1] : vector<8x32xf32> to vector<8xf32>
    %214 = vector.shape_cast %213 : vector<8xf32> to vector<8x1xf32>
    %cst_126 = arith.constant 3.200000e+01 : f32
    %215 = vector.broadcast %cst_126 : f32 to vector<8x1xf32>
    %216 = arith.divf %214, %215 : vector<8x1xf32>
    %217 = vector.broadcast %216 : vector<8x1xf32> to vector<8x32xf32>
    %218 = arith.subf %210, %217 : vector<8x32xf32>
    %219 = arith.mulf %218, %218 : vector<8x32xf32>
    %cst_127 = arith.constant dense<0.000000e+00> : vector<8xf32>
    %220 = vector.multi_reduction <add>, %219, %cst_127 [1] : vector<8x32xf32> to vector<8xf32>
    %221 = vector.shape_cast %220 : vector<8xf32> to vector<8x1xf32>
    %cst_128 = arith.constant 3.200000e+01 : f32
    %222 = vector.broadcast %cst_128 : f32 to vector<8x1xf32>
    %223 = arith.divf %221, %222 : vector<8x1xf32>
    %224 = vector.broadcast %216 : vector<8x1xf32> to vector<8x32xf32>
    %225 = arith.subf %210, %224 : vector<8x32xf32>
    %cst_129 = arith.constant 9.99999974E-6 : f32
    %226 = vector.broadcast %cst_129 : f32 to vector<8x1xf32>
    %227 = arith.addf %223, %226 : vector<8x1xf32>
    %228 = math.rsqrt %227 : vector<8x1xf32>
    %229 = vector.broadcast %228 : vector<8x1xf32> to vector<8x32xf32>
    %230 = arith.mulf %225, %229 : vector<8x32xf32>
    %231 = vector.broadcast %211 : vector<1x32xf32> to vector<8x32xf32>
    %232 = arith.mulf %230, %231 : vector<8x32xf32>
    %233 = vector.broadcast %212 : vector<1x32xf32> to vector<8x32xf32>
    %234 = arith.addf %232, %233 : vector<8x32xf32>
    %c0_130 = arith.constant 0 : index
    %c0_131 = arith.constant 0 : index
    %c0_132 = arith.constant 0 : index
    %235 = vector.load %arg17[%c0_130, %c0_131, %c0_132] : memref<1x8x32xf32, #tpu.memory_space<vmem>>, vector<1x8x32xf32>
    %236 = vector.shape_cast %235 : vector<1x8x32xf32> to vector<8x32xf32>
    %237 = vector.shape_cast %234 : vector<8x32xf32> to vector<1x8x32xf32>
    tpu.vector_store %arg17[%c0_130, %c0_131, %c0_132], %237 {strides = array<i32>} : memref<1x8x32xf32, #tpu.memory_space<vmem>>, vector<1x8x32xf32>,
    return
  }
  func.func @transform_0(%arg0: i32) -> (i32, i32, i32) {
    %c0_i32 = arith.constant 0 : i32
    %c0_i32_0 = arith.constant 0 : i32
    %c0_i32_1 = arith.constant 0 : i32
    return %arg0, %c0_i32, %c0_i32_0 : i32, i32, i32
  }
  func.func @transform_1(%arg0: i32) -> (i32, i32, i32) {
    %c0_i32 = arith.constant 0 : i32
    %c0_i32_0 = arith.constant 0 : i32
    %c0_i32_1 = arith.constant 0 : i32
    return %arg0, %c0_i32, %c0_i32_0 : i32, i32, i32
  }
  func.func @transform_2(%arg0: i32) -> (i32, i32, i32, i32) {
    %c0_i32 = arith.constant 0 : i32
    %c0_i32_0 = arith.constant 0 : i32
    %c0_i32_1 = arith.constant 0 : i32
    %c0_i32_2 = arith.constant 0 : i32
    %c0_i32_3 = arith.constant 0 : i32
    return %c0_i32, %c0_i32_0, %c0_i32_1, %c0_i32_2 : i32, i32, i32, i32
  }
  func.func @transform_3(%arg0: i32) -> (i32, i32, i32, i32) {
    %c0_i32 = arith.constant 0 : i32
    %c0_i32_0 = arith.constant 0 : i32
    %c0_i32_1 = arith.constant 0 : i32
    %c0_i32_2 = arith.constant 0 : i32
    %c0_i32_3 = arith.constant 0 : i32
    return %c0_i32, %c0_i32_0, %c0_i32_1, %c0_i32_2 : i32, i32, i32, i32
  }
  func.func @transform_4(%arg0: i32) -> (i32, i32, i32, i32) {
    %c0_i32 = arith.constant 0 : i32
    %c0_i32_0 = arith.constant 0 : i32
    %c0_i32_1 = arith.constant 0 : i32
    %c0_i32_2 = arith.constant 0 : i32
    %c0_i32_3 = arith.constant 0 : i32
    return %c0_i32, %c0_i32_0, %c0_i32_1, %c0_i32_2 : i32, i32, i32, i32
  }
  func.func @transform_5(%arg0: i32) -> (i32, i32, i32) {
    %c0_i32 = arith.constant 0 : i32
    %c0_i32_0 = arith.constant 0 : i32
    %c0_i32_1 = arith.constant 0 : i32
    %c0_i32_2 = arith.constant 0 : i32
    return %c0_i32, %c0_i32_0, %c0_i32_1 : i32, i32, i32
  }
  func.func @transform_6(%arg0: i32) -> (i32, i32, i32) {
    %c0_i32 = arith.constant 0 : i32
    %c0_i32_0 = arith.constant 0 : i32
    %c0_i32_1 = arith.constant 0 : i32
    %c0_i32_2 = arith.constant 0 : i32
    return %c0_i32, %c0_i32_0, %c0_i32_1 : i32, i32, i32
  }
  func.func @transform_7(%arg0: i32) -> (i32, i32, i32) {
    %c0_i32 = arith.constant 0 : i32
    %c0_i32_0 = arith.constant 0 : i32
    %c0_i32_1 = arith.constant 0 : i32
    %c0_i32_2 = arith.constant 0 : i32
    return %c0_i32, %c0_i32_0, %c0_i32_1 : i32, i32, i32
  }
  func.func @transform_8(%arg0: i32) -> (i32, i32, i32) {
    %c0_i32 = arith.constant 0 : i32
    %c0_i32_0 = arith.constant 0 : i32
    %c0_i32_1 = arith.constant 0 : i32
    %c0_i32_2 = arith.constant 0 : i32
    return %c0_i32, %c0_i32_0, %c0_i32_1 : i32, i32, i32
  }
  func.func @transform_9(%arg0: i32) -> (i32, i32, i32) {
    %c0_i32 = arith.constant 0 : i32
    %c0_i32_0 = arith.constant 0 : i32
    %c0_i32_1 = arith.constant 0 : i32
    %c0_i32_2 = arith.constant 0 : i32
    return %c0_i32, %c0_i32_0, %c0_i32_1 : i32, i32, i32
  }
  func.func @transform_10(%arg0: i32) -> (i32, i32, i32) {
    %c0_i32 = arith.constant 0 : i32
    %c0_i32_0 = arith.constant 0 : i32
    %c0_i32_1 = arith.constant 0 : i32
    %c0_i32_2 = arith.constant 0 : i32
    return %c0_i32, %c0_i32_0, %c0_i32_1 : i32, i32, i32
  }
  func.func @transform_11(%arg0: i32) -> (i32, i32, i32) {
    %c0_i32 = arith.constant 0 : i32
    %c0_i32_0 = arith.constant 0 : i32
    %c0_i32_1 = arith.constant 0 : i32
    %c0_i32_2 = arith.constant 0 : i32
    return %c0_i32, %c0_i32_0, %c0_i32_1 : i32, i32, i32
  }
  func.func @transform_12(%arg0: i32) -> (i32, i32, i32) {
    %c0_i32 = arith.constant 0 : i32
    %c0_i32_0 = arith.constant 0 : i32
    %c0_i32_1 = arith.constant 0 : i32
    %c0_i32_2 = arith.constant 0 : i32
    return %c0_i32, %c0_i32_0, %c0_i32_1 : i32, i32, i32
  }
  func.func @transform_13(%arg0: i32) -> (i32, i32, i32) {
    %c0_i32 = arith.constant 0 : i32
    %c0_i32_0 = arith.constant 0 : i32
    %c0_i32_1 = arith.constant 0 : i32
    %c0_i32_2 = arith.constant 0 : i32
    return %c0_i32, %c0_i32_0, %c0_i32_1 : i32, i32, i32
  }
  func.func @transform_14(%arg0: i32) -> (i32, i32) {
    %c0_i32 = arith.constant 0 : i32
    %c0_i32_0 = arith.constant 0 : i32
    %c0_i32_1 = arith.constant 0 : i32
    return %c0_i32, %c0_i32_0 : i32, i32
  }
  func.func @transform_15(%arg0: i32) -> (i32, i32) {
    %c0_i32 = arith.constant 0 : i32
    %c0_i32_0 = arith.constant 0 : i32
    %c0_i32_1 = arith.constant 0 : i32
    return %c0_i32, %c0_i32_0 : i32, i32
  }
  func.func @transform_16(%arg0: i32) -> (i32, i32, i32) {
    %c0_i32 = arith.constant 0 : i32
    %c0_i32_0 = arith.constant 0 : i32
    %c0_i32_1 = arith.constant 0 : i32
    return %arg0, %c0_i32, %c0_i32_0 : i32, i32, i32
  }
}

</mosaic_0001>

<bundles_post_ra>
// kernel: encoder_forward.1
= control target key start
LH: loop header
LB: loop body
LE: loop exit
PB: predicated region body
PF: predicated region fallthrough
CT: control target
= control target key end

     0   :  { %s2782_s0 = inlined_call_operand.vmem [shape: f32[2,8,32], index: 0, kind: input, shape index: {}]   ;;  %s2783_s1 = inlined_call_operand.vmem [shape: f32[2,1,8], index: 1, kind: input, shape index: {}]   ;;  %s2784_s2 = inlined_call_operand.vmem [shape: f32[2,4,32,24], index: 2, kind: input, shape index: {}]   ;;  %s2785_s3 = inlined_call_operand.vmem [shape: f32[2,4,1,24], index: 3, kind: input, shape index: {}]   ;;  %s2786_s4 = inlined_call_operand.vmem [shape: f32[2,4,8,32], index: 4, kind: input, shape index: {}]   ;;  %s2787_s5 = inlined_call_operand.vmem [shape: f32[2,1,32], index: 5, kind: input, shape index: {}]   ;;  %s2788_s6 = inlined_call_operand.vmem [shape: f32[2,32,64], index: 6, kind: input, shape index: {}]   ;;  %s2789_s7 = inlined_call_operand.vmem [shape: f32[2,1,64], index: 7, kind: input, shape index: {}]   ;;  %s2790_s8 = inlined_call_operand.vmem [shape: f32[2,64,32], index: 8, kind: input, shape index: {}]   ;;  %s2791_s9 = inlined_call_operand.vmem [shape: f32[2,1,32], index: 9, kind: input, shape index: {}]   ;;  %s2792_s10 = inlined_call_operand.vmem [shape: f32[2,1,32], index: 10, kind: input, shape index: {}]   ;;  %s2793_s11 = inlined_call_operand.vmem [shape: f32[2,1,32], index: 11, kind: input, shape index: {}]   ;;  %s2794_s12 = inlined_call_operand.vmem [shape: f32[2,1,32], index: 12, kind: input, shape index: {}]   ;;  %s2795_s13 = inlined_call_operand.vmem [shape: f32[2,1,32], index: 13, kind: input, shape index: {}]   ;;  %s2796_s14 = inlined_call_operand.vmem [shape: f32[1,32], index: 14, kind: input, shape index: {}]   ;;  %s2797_s15 = inlined_call_operand.vmem [shape: f32[1,32], index: 15, kind: input, shape index: {}]   ;;  %s2798_s16 = inlined_call_operand.hbm [shape: f32[2,8,32], index: 16, kind: output, shape index: {}]  }
   0x1   :  { %2807 = sst [smem:[#allocation12_spill]] %s2782_s0 }
   0x2   :  { %2808 = sst [smem:[#allocation13_spill]] %s2797_s15 }
   0x3   :  { %21 = vsyncpa [#allocation3], 0 }
   0x4   :  { %23 = vsyncpa [#allocation3 + $0x1], 0  ;;  %s2279_s21 = smov 0   ;;  %s2281_s22 = smov 0  }
   0x5   :  { %s2283_s23 = smov 0   ;;  %s2285_s24 = smov 0  }
   0x6 LB: > { %2809 = sst [smem:[#allocation5_spill]] %s2177_s21  ;;  %s2300_s25 = sadd.s32 4294967295, %s2189_s24   ;;  %s2189_s24 = sphi %s2285_s24, %s2824_s24   ;;  %s2185_s23 = sphi %s2283_s23, %s2826_s23   ;;  %s2181_s22 = sphi %s2281_s22, %s2828_s22   ;;  %s2177_s21 = sphi %s2279_s21, %s2827_s21  }
   0x7   : > { %2810 = sst [smem:[#allocation6_spill]] %s2185_s23  ;;  %s1899_s26 = sadd.s32 4294967294, %s2189_s24  }
   0x8   : > { %2811 = sst [smem:[#allocation7_spill]] %s2189_s24  ;;  %s2304_s27 = sadd.s32 1, %s2189_s24  }
   0x9   : > { %2812 = sst [smem:[#allocation8_spill]] %s2304_s27  ;;  %s382_s28 = sadd.s32 1, %s2185_s23 }
   0xa   : > { %s379_s29 = ssub.s32 %s2189_s24, %s2304_s27  ;;  %p392_p0 = scmp.ne.s32.totalorder %s2185_s23, %s2181_s22 }
   0xb   : > { %p380_p1 = scmp.eq.s32.totalorder %s379_s29, 0  ;;  %p393_p2 = scmp.eq.s32.totalorder %s2300_s25, 1 }
   0xc   : > { %p398_p3 = scmp.ne.s32.totalorder %s2181_s22, %s2177_s21  ;;  %p399_p4 = scmp.eq.s32.totalorder %s1899_s26, 1 }
   0xd   : > { %s2315_s30 = scalar_select %p380_p1, %s2185_s23, %s382_s28  }
   0xe   : > { %p2317_p5 = por %p393_p2, %p392_p0  ;;  %p2321_p6 = por %p399_p4, %p398_p3 }
   0xf   : > { %2813 = sst [smem:[#allocation9_spill]] %s2315_s30  ;;  %p1902_p7 = scmp.ge.s32.totalorder %s2189_s24, 1 }
  0x10   : > { %s2814_s0 = scalar_select %p2317_p5, 1, 0 }
  0x11   : > { %s2816_s17 = scalar_select %p2321_p6, 1, 0 }
  0x12   : > { %2815 = sst [smem:[#allocation10_spill]] %s2814_s0  ;;  %p472_p8 = scmp.lt.s32.totalorder %s2189_s24, 3 }
  0x13   : > { %2817 = sst [smem:[#allocation11_spill]] %s2816_s17 }
  0x14   : > { %p473_p9 = pnand %p1902_p7, %p472_p8 }
  0x15   : > { %p524_p10 = scmp.lt.s32.totalorder (!%p473_p9), %s2300_s25, 1  ;;  %s2818_s0 = sld [smem:[#allocation12_spill]] (!%p473_p9) }
  0x16   : > { %476 = sbr.rel (%p473_p9) target bundleno = 3775 (0xebf), region = 84  ;;  %s2191_s27 = smov (!%p473_p9), 120  }
  0x17   : > { %s1993_s18 = sshll.u32 (!%p473_p9), %s2300_s25, 3 }
  0x1b   : > { %v536_v0 = vld [vmem:[%s2784_s2 + $0x18] sm:$0xff]  ;;  %v535_v3 = vld [vmem:[%s2784_s2 + $0x10] sm:$0xff]  ;;  %v534_v6 = vld [vmem:[%s2784_s2 + $0x8] sm:$0xff]  ;;  %s2353_s21 = scalar_select %p524_p10, %s2300_s25, 1  ;;  %vm565_vm0 = vcmask 261120   ;;  %vm655_vm1 = vcmask 64512  }
  0x1c   : > { %v544_v1 = vld [vmem:[%s2784_s2 + $0x58] sm:$0xff]  ;;  %581 = vmatpush.msra.mxu1 %v536_v0  ;;  %v543_v4 = vld [vmem:[%s2784_s2 + $0x50] sm:$0xff]  ;;  %v542_v7 = vld [vmem:[%s2784_s2 + $0x48] sm:$0xff]  ;;  %vm1101_vm6 = vcmask 523264  }
  0x1d   : > { %v548_v2 = vld [vmem:[%s2784_s2 + $0x78] sm:$0xff]  ;;  %621 = vmatpush.msra.mxu2 %v544_v1  ;;  %v547_v5 = vld [vmem:[%s2784_s2 + $0x70] sm:$0xff]  ;;  %v546_v8 = vld [vmem:[%s2784_s2 + $0x68] sm:$0xff]  ;;  %s1904_s20 = sshll.u32 %s2353_s21, 3  ;;  %s530_s29 = scalar_lea.vmem %s2783_s1, %s2353_s21 }
  0x1e   : > { %641 = vmatpush.msra.mxu3 %v548_v2  ;;  %582 = vmatpush.msra.mxu1 %v535_v3  ;;  %v533_v9 = vld [vmem:[%s2784_s2] sm:$0xff]  ;;  %s527_s30 = scalar_lea.vmem %s2818_s0, %s1904_s20  ;;  %v540_v13 = vld [vmem:[%s2784_s2 + $0x38] sm:$0xff]  ;;  %v539_v14 = vld [vmem:[%s2784_s2 + $0x30] sm:$0xff]  ;;  %s2192_s21 = smov 112  }
  0x1f   : > { %622 = vmatpush.msra.mxu2 %v543_v4  ;;  %v541_v10 = vld [vmem:[%s2784_s2 + $0x40] sm:$0xff]  ;;  %v538_v15 = vld [vmem:[%s2784_s2 + $0x28] sm:$0xff]  ;;  %s1826_s0 = scalar_lea.hbm %s2798_s16, %s1993_s18 }
  0x20   : > { %642 = vmatpush.msra.mxu3 %v547_v5  ;;  %583 = vmatpush.msra.mxu1 %v534_v6  ;;  %v545_v11 = vld [vmem:[%s2784_s2 + $0x60] sm:$0xff]  ;;  %s1830_s23 = sshll.u32 %s1826_s0, 4  ;;  %s1831_s23 = int_to_ptr.hbm [resolvable:$true] %s1830_s23 }
  0x21   : > { %623 = vmatpush.msra.mxu2 %v542_v7  ;;  %v2375_v12 = vld [vmem:[%s527_s30] sm:$0xff]  ;;  %s521_s30 = sand.u32 1, %s2181_s22   ;;  %s2141_s26 = sshra.s32 %s1831_s23, 4  ;;  %s2142_s26 = int_to_ptr.hbm [resolvable:$true] %s2141_s26 }
  0x22   : > { %643 = vmatpush.msra.mxu3 %v546_v8  ;;  %584 = vmatpush.msra.mxu1 %v533_v9  ;;  %v537_v16 = vld [vmem:[%s2784_s2 + $0x20] sm:$0xff]  ;;  %s1903_s17 = sshll.u32 %s521_s30, 3  ;;  %s1816_s19 = scalar_lea.sflag [#allocation3], %s521_s30 }
  0x23   : > { %624 = vmatpush.msra.mxu2 %v541_v10  ;;  %1905 = vmatmul.msk.f32.vlgmr.msra.gmra.mxu1 %vm565_vm0, %v2375_v12  ;;  %v2059_v17 = vld [vmem:[%s2785_s3] ss:$0 sm:$0xff]  ;;  %v2060_v20 = vld [vmem:[%s2785_s3 + $0x2] ss:$0 sm:$0xff]  ;;  %v2062_v21 = vld [vmem:[%s2785_s3 + $0x1] ss:$0 sm:$0xff]  ;;  %p2148_p0 = scmp.lt.s32.totalorder %s2142_s26, %s2798_s16 }
  0x24   : > { %644 = vmatpush.msra.mxu3 %v545_v11  ;;  %1907 = vmatmul.msk.f32.vlgmr.msra.gmra.mxu2 %vm565_vm0, %v2375_v12  ;;  %v2061_v26 = vld [vmem:[%s2785_s3 + $0x3] ss:$0 sm:$0xff]  ;;  %v2426_v33 = vld [vmem:[%s530_s29] ss:$0 sm:$0xff]  ;;  %s523_s28 = scalar_lea.vmem [#allocation2], %s1903_s17  ;;  %s2143_s18 = scalar_lea.hbm %s2142_s26, 8 }
  0x25   : > { %1908 = vmatmul.msk.f32.vlgmr.msra.gmra.mxu3 %vm565_vm0, %v2375_v12  ;;  %601 = vmatpush.msrb.mxu1 %v540_v13  ;;  %s1828_s25 = sshll.u32 %s523_s28, 4  ;;  %p2144_p11 = scmp.ne.s32.totalorder %s2142_s26, %s2143_s18  ;;  %s1829_s25 = int_to_ptr.vmem [resolvable:$true] %s1828_s25 }
  0x26   : > { %s2147_s17 = scalar_lea.hbm %s2798_s16, 16 }
  0x27   : > { %602 = vmatpush.msrb.mxu1 %v539_v14  ;;  %p2145_p12 = pnand %p2144_p11, %p2317_p5  ;;  %p2149_p1 = scmp.lt.s32.totalorder %s2147_s17, %s2143_s18 }
  0x29   : > { %603 = vmatpush.msrb.mxu1 %v538_v15  ;;  %p2146_p13 = pneg %p2145_p12  ;;  %p2150_p2 = por %p2149_p1, %p2148_p0 }
  0x2b   : > { %604 = vmatpush.msrb.mxu1 %v537_v16  ;;  %p2151_p3 = pnand %p2150_p2, %p2146_p13 }
  0x2c   : > { %1906 = vmatmul.msk.f32.vlgmr.msrb.gmra.mxu1 %vm565_vm0, %v2375_v12 }
  0xa0   : > { %v586_v18 = vpop.f32.mrf.mxu1 }
  0xa1   : > { %v587_v19 = vadd.f32 %v2059_v17, %v586_v18 }
  0xa3   : > { %653 = vrot.lane.b32.xlu1 %v587_v19, %s2191_s27 }
  0xa7   : > { %v626_v22 = vpop.f32.mrf.mxu2 }
  0xa8   : > { %v627_v23 = vadd.f32 %v2060_v20, %v626_v22  ;;  %v646_v27 = vpop.f32.mrf.mxu3 }
  0xa9   : > { %v606_v24 = vpop.f32.mrf.mxu1  ;;  %v647_v28 = vadd.f32 %v2061_v26, %v646_v27  ;;  %v909_v26 = vld [vmem:[%s2786_s4] sm:$0xff] }
  0xaa   : > { %v607_v25 = vadd.f32 %v2062_v21, %v606_v24  ;;  %708 = vrot.lane.b32.xlu0 %v627_v23, %s2191_s27  ;;  %v911_v24 = vld [vmem:[%s2786_s4 + $0x10] sm:$0xff] }
  0xab   : > { %v2038_v47 = vpack.i.bf16 %v647_v28, %v627_v23 }
  0xac   : > { %681 = vrot.lane.b32.xlu1 %v607_v25, %s2191_s27  ;;  %v2043_v46 = vpack.i.bf16 %v607_v25, %v587_v19 }
  0xb2   : > { %735 = vrot.lane.b32.xlu0 %v647_v28, %s2191_s27 }
 0x115   : > { %v654_v29 = vpop.permute.xlu1 %653 }
 0x116   : > { %1909 = vmatpush.xpose.msk.msra.mxu0 %vm655_vm1, %v654_v29 }
 0x119   : > { %1910 = vmatmul.msk.f32.vlgmr.msra.gmra.mxu0 %vm655_vm1, %v587_v19 }
 0x11c   : > { %v709_v30 = vpop.permute.xlu0 %708 }
 0x11d   : > { %1913 = vmatpush.xpose.msk.msrb.mxu2 %vm655_vm1, %v709_v30 }
 0x11e   : > { %v682_v31 = vpop.permute.xlu1 %681 }
 0x11f   : > { %1911 = vmatpush.xpose.msk.msra.mxu1 %vm655_vm1, %v682_v31 }
 0x120   : > { %1914 = vmatmul.msk.f32.vlgmr.msrb.gmra.mxu2 %vm655_vm1, %v627_v23  ;;  %v910_v23 = vld [vmem:[%s2786_s4 + $0x8] sm:$0xff] }
 0x122   : > { %1912 = vmatmul.msk.f32.vlgmr.msra.gmra.mxu1 %vm655_vm1, %v607_v25  ;;  %v912_v25 = vld [vmem:[%s2786_s4 + $0x18] sm:$0xff] }
 0x124   : > { %v736_v32 = vpop.permute.xlu0 %735 }
 0x125   : > { %1915 = vmatpush.xpose.msk.msrb.mxu3 %vm655_vm1, %v736_v32 }
 0x128   : > { %1916 = vmatmul.msk.f32.vlgmr.msrb.gmra.mxu3 %vm655_vm1, %v647_v28 }
 0x196   : > { %v677_v34 = vpop.f32.mrf.mxu0 }
 0x197   : > { %v678_v35 = vadd.f32 %v2426_v33, %v677_v34 }
 0x199   : > { %v761_v36 = vsel %vm655_vm1, %v678_v35, -inf }
 0x19a   : > { %762 = vmax.xlane.f32.xlu0 %v761_v36 }
 0x19f   : > { %v704_v37 = vpop.f32.mrf.mxu1 }
 0x1a0   : > { %v705_v38 = vadd.f32 %v2426_v33, %v704_v37 }
 0x1a2   : > { %v764_v39 = vsel %vm655_vm1, %v705_v38, -inf }
 0x1a3   : > { %v731_v40 = vpop.f32.mrf.mxu2  ;;  %765 = vmax.xlane.f32.xlu1 %v764_v39 }
 0x1a4   : > { %v732_v41 = vadd.f32 %v2426_v33, %v731_v40 }
 0x1a6   : > { %v767_v42 = vsel %vm655_vm1, %v732_v41, -inf }
 0x1a7   : > { %768 = vmax.xlane.f32.xlu2 %v767_v42 }
 0x1ab   : > { %v758_v43 = vpop.f32.mrf.mxu3 }
 0x1ac   : > { %v759_v44 = vadd.f32 %v2426_v33, %v758_v43 }
 0x1ae   : > { %v770_v45 = vsel %vm655_vm1, %v759_v44, -inf }
 0x1af   : > { %771 = vmax.xlane.f32.xlu2 %v770_v45 }
 0x1bc   : > { %2044 = vrot.lane.b32.xlu1 %v2043_v46, %s2192_s21 }
 0x1c7   : > { %2039 = vrot.lane.b32.xlu2 %v2038_v47, %s2192_s21  ;;  %v2193_v47 = vmov 32.0  }
 0x20d   : > { %v763_v55 = vpop.xlane.xlu0 %762 }
 0x20e   : > { %v773_v60 = vsub.f32 %v678_v35, %v763_v55 }
 0x210   : > { %v777_v63 = vmul.f32 1.442695, %v773_v60  ;;  %v1058_v60 = vld [vmem:[%s2788_s6 + $0x8] sm:$0xff] }
 0x216   : > { %v766_v48 = vpop.xlane.xlu1 %765 }
 0x217   : > { %v774_v49 = vsub.f32 %v705_v38, %v766_v48 }
 0x219   : > { %v779_v50 = vmul.f32 1.442695, %v774_v49 }
 0x21a   : > { %v769_v51 = vpop.xlane.xlu2 %768 }
 0x21b   : > { %2083 = vpow2.f32 %v779_v50  ;;  %v775_v52 = vsub.f32 %v732_v41, %v769_v51  ;;  %v2063_v41 = vld [vmem:[%s2787_s5] ss:$0 sm:$0xff] }
 0x21d   : > { %v781_v53 = vmul.f32 1.442695, %v775_v52 }
 0x21f   : > { %2085 = vpow2.f32 %v781_v53 }
 0x221   : > { %v2084_v54 = vpop.eup %2083 }
 0x222   : > { %v772_v56 = vpop.xlane.xlu2 %771  ;;  %v788_v57 = vsel %vm655_vm1, %v2084_v54, 0.0 }
 0x223   : > { %v776_v58 = vsub.f32 %v759_v44, %v772_v56  ;;  %789 = vadd.xlane.f32.xlu0 %v788_v57 }
 0x225   : > { %v2086_v59 = vpop.eup %2085  ;;  %v783_v61 = vmul.f32 1.442695, %v776_v58  ;;  %v1060_v58 = vld [vmem:[%s2788_s6 + $0x18] sm:$0xff] }
 0x226   : > { %v791_v62 = vsel %vm655_vm1, %v2086_v59, 0.0 }
 0x227   : > { %2087 = vpow2.f32 %v783_v61  ;;  %792 = vadd.xlane.f32.xlu2 %v791_v62  ;;  %v1057_v61 = vld [vmem:[%s2788_s6] sm:$0xff]  ;;  %v1096_v62 = vld [vmem:[%s2790_s8 + $0x38] sm:$0xff] }
 0x228   : > { %2089 = vpow2.f32 %v777_v63  ;;  %v1095_v63 = vld [vmem:[%s2790_s8 + $0x30] sm:$0xff] }
 0x22a   : > { %v2040_v0 = vpop.permute.xlu2 %2039 }
 0x22b   : > { %v2042_v1 = vunpack.i.h.bf16 %v2040_v0  ;;  %v2041_v2 = vunpack.i.l.bf16 %v2040_v0  ;;  %v1094_v0 = vld [vmem:[%s2790_s8 + $0x28] sm:$0xff] }
 0x22d   : > { %v2088_v3 = vpop.eup %2087  ;;  %878 = vmatpush.msra.mxu2 %v2041_v2  ;;  %904 = vmatpush.msra.mxu3 %v2042_v1 }
 0x22e   : > { %v2045_v4 = vpop.permute.xlu1 %2044  ;;  %v794_v5 = vsel %vm655_vm1, %v2088_v3, 0.0  ;;  %v2090_v8 = vpop.eup %2089 }
 0x22f   : > { %v2047_v6 = vunpack.i.h.bf16 %v2045_v4  ;;  %795 = vadd.xlane.f32.xlu2 %v794_v5  ;;  %v2046_v7 = vunpack.i.l.bf16 %v2045_v4  ;;  %v785_v9 = vsel %vm655_vm1, %v2090_v8, 0.0  ;;  %977 = vmatpush.msrb.mxu2 %v911_v24  ;;  %v1092_v5 = vld [vmem:[%s2790_s8 + $0x18] sm:$0xff] }
 0x230   : > { %1000 = vmatpush.msrb.mxu3 %v912_v25 }
 0x231   : > { %826 = vmatpush.msrb.mxu0 %v2046_v7  ;;  %852 = vmatpush.msrb.mxu1 %v2047_v6 }
 0x233   : > { %954 = vmatpush.msra.mxu1 %v910_v23  ;;  %931 = vmatpush.msra.mxu0 %v909_v26  ;;  %v2067_v26 = vld [vmem:[%s2791_s9] ss:$0 sm:$0xff] }
 0x237   : > { %786 = vadd.xlane.f32.xlu2 %v785_v9 }
 0x296   : > { %v790_v10 = vpop.xlane.xlu0 %789 }
 0x297   : > { %2091 = vrcp.f32 %v790_v10 }
 0x29a   : > { %v793_v11 = vpop.xlane.xlu2 %792 }
 0x29b   : > { %2093 = vrcp.f32 %v793_v11 }
 0x29d   : > { %v2092_v13 = vpop.eup %2091 }
 0x29e   : > { %v802_v14 = vmul.f32 %v2092_v13, %v2084_v54  ;;  %v2064_v13 = vld [vmem:[%s2792_s10] ss:$0 sm:$0xff] }
 0x2a0   : > { %1918 = vmatmul.msk.f32.vlgmr.msrb.gmra.mxu1 %vm655_vm1, %v802_v14 }
 0x2a1   : > { %v2094_v15 = vpop.eup %2093  ;;  %1113 = vmatpush.msrb.mxu1 %v1096_v62  ;;  %v2068_v62 = vld [vmem:[%s2794_s12] ss:$0 sm:$0xff] }
 0x2a2   : > { %v803_v16 = vmul.f32 %v2094_v15, %v2086_v59  ;;  %v796_v17 = vpop.xlane.xlu2 %795  ;;  %v1059_v59 = vld [vmem:[%s2788_s6 + $0x10] sm:$0xff] }
 0x2a3   : > { %2095 = vrcp.f32 %v796_v17  ;;  %1114 = vmatpush.msrb.mxu1 %v1095_v63 }
 0x2a4   : > { %1919 = vmatmul.msk.f32.vlgmr.msra.gmra.mxu2 %vm655_vm1, %v803_v16  ;;  %v2065_v16 = vld [vmem:[%s2793_s11] ss:$0 sm:$0xff] }
 0x2a5   : > { %1115 = vmatpush.msrb.mxu1 %v1094_v0 }
 0x2a9   : > { %v2096_v18 = vpop.eup %2095 }
 0x2aa   : > { %v804_v19 = vmul.f32 %v2096_v18, %v2088_v3  ;;  %v787_v20 = vpop.xlane.xlu2 %786  ;;  %v1093_v3 = vld [vmem:[%s2790_s8 + $0x20] sm:$0xff] }
 0x2ab   : > { %2097 = vrcp.f32 %v787_v20  ;;  %1116 = vmatpush.msrb.mxu1 %v1093_v3  ;;  %v1090_v20 = vld [vmem:[%s2790_s8 + $0x8] sm:$0xff] }
 0x2ac   : > { %1920 = vmatmul.msk.f32.vlgmr.msra.gmra.mxu3 %vm655_vm1, %v804_v19  ;;  %2099 = vrcp.f32 %v2193_v47  ;;  %v1091_v19 = vld [vmem:[%s2790_s8 + $0x10] sm:$0xff]  ;;  %v1931_v47 = vld [vmem:[%s2784_s2 + $0xa0] sm:$0xff] }
 0x2ad   : > { %1117 = vmatpush.msrb.mxu1 %v1092_v5 }
 0x2af   : > { %1118 = vmatpush.msrb.mxu1 %v1091_v19 }
 0x2b1   : > { %v2098_v21 = vpop.eup %2097  ;;  %1119 = vmatpush.msrb.mxu1 %v1090_v20 }
 0x2b2   : > { %v801_v22 = vmul.f32 %v2098_v21, %v2090_v8  ;;  %v2100_v48 = vpop.eup %2099  ;;  %v1089_v21 = vld [vmem:[%s2790_s8] sm:$0xff] }
 0x2b3   : > { %v1024_v49 = vmul.f32 32.0, %v2100_v48  ;;  %vm1028_vm2 = vweird.f32 %v2100_v48  ;;  %1120 = vmatpush.msrb.mxu1 %v1089_v21 }
 0x2b4   : > { %1917 = vmatmul.msk.f32.vlgmr.msrb.gmra.mxu0 %vm655_vm1, %v801_v22  ;;  %v2066_v22 = vld [vmem:[%s2789_s7] ss:$0 sm:$0xff] }
 0x2b5   : > { %v1025_v50 = vsub.f32 1.0, %v1024_v49  ;;  %1080 = vmatpush.msrb.mxu0 %v1060_v58  ;;  %v1942_v49 = vld [vmem:[%s2784_s2 + $0xf8] sm:$0xff] }
 0x2b7   : > { %v1026_v51 = vmul.f32 %v2100_v48, %v1025_v50  ;;  %1081 = vmatpush.msrb.mxu0 %v1059_v59  ;;  %v1941_v50 = vld [vmem:[%s2784_s2 + $0xf0] sm:$0xff] }
 0x2b9   : > { %v1027_v52 = vadd.f32 %v2100_v48, %v1026_v51  ;;  %1082 = vmatpush.msrb.mxu0 %v1058_v60 }
 0x2bb   : > { %v2471_v53 = vsel %vm1028_vm2, %v2100_v48, %v1027_v52  ;;  %1083 = vmatpush.msrb.mxu0 %v1057_v61  ;;  %v1935_v48 = vld [vmem:[%s2784_s2 + $0xc0] sm:$0xff]  ;;  %v1940_v52 = vld [vmem:[%s2784_s2 + $0xe8] sm:$0xff] }
 0x31d   : > { %v854_v27 = vpop.f32.mrf.mxu1 }
 0x31e   : > { %1922 = vmatmul.msk.f32.vlgmr.msra.gmra.mxu1 %vm655_vm1, %v854_v27 }
 0x327   : > { %v880_v28 = vpop.f32.mrf.mxu2 }
 0x328   : > { %1923 = vmatmul.msk.f32.vlgmr.msrb.gmra.mxu2 %vm655_vm1, %v880_v28 }
 0x32f   : > { %v906_v29 = vpop.f32.mrf.mxu3 }
 0x330   : > { %1924 = vmatmul.msk.f32.vlgmr.msrb.gmra.mxu3 %vm655_vm1, %v906_v29 }
 0x331   : > { %v828_v30 = vpop.f32.mrf.mxu0 }
 0x332   : > { %1921 = vmatmul.msk.f32.vlgmr.msra.gmra.mxu0 %vm655_vm1, %v828_v30 }
 0x39b   : > { %v956_v31 = vpop.f32.mrf.mxu1 }
 0x39c   : > { %v1006_v35 = vsel %vm565_vm0, %v956_v31, 0.0 }
 0x3ab   : > { %v979_v32 = vpop.f32.mrf.mxu2 }
 0x3ac   : > { %v1008_v38 = vsel %vm565_vm0, %v979_v32, 0.0 }
 0x3af   : > { %v933_v34 = vpop.f32.mrf.mxu0 }
 0x3b0   : > { %v1005_v36 = vsel %vm565_vm0, %v933_v34, 0.0 }
 0x3b1   : > { %v1007_v37 = vadd.f32 %v1006_v35, %v1005_v36 }
 0x3b3   : > { %v1002_v39 = vpop.f32.mrf.mxu3  ;;  %v1009_v40 = vadd.f32 %v1008_v38, %v1007_v37  ;;  %v1930_v37 = vld [vmem:[%s2784_s2 + $0x98] sm:$0xff] }
 0x3b4   : > { %v1010_v42 = vsel %vm565_vm0, %v1002_v39, 0.0  ;;  %v1934_v38 = vld [vmem:[%s2784_s2 + $0xb8] sm:$0xff]  ;;  %1207 = vmatpush.msra.mxu2 %v1930_v37 }
 0x3b5   : > { %v1011_v43 = vadd.f32 %v1010_v42, %v1009_v40  ;;  %v1938_v39 = vld [vmem:[%s2784_s2 + $0xd8] sm:$0xff]  ;;  %1227 = vmatpush.msra.mxu3 %v1934_v38  ;;  %v1929_v40 = vld [vmem:[%s2784_s2 + $0x90] sm:$0xff] }
 0x3b6   : > { %1247 = vmatpush.msra.mxu0 %v1938_v39  ;;  %v1937_v42 = vld [vmem:[%s2784_s2 + $0xd0] sm:$0xff]  ;;  %1208 = vmatpush.msra.mxu2 %v1929_v40 }
 0x3b7   : > { %v1016_v44 = vadd.f32 %v2063_v41, %v1011_v43  ;;  %v1933_v41 = vld [vmem:[%s2784_s2 + $0xb0] sm:$0xff]  ;;  %v1928_v43 = vld [vmem:[%s2784_s2 + $0x88] sm:$0xff] }
 0x3b8   : > { %1228 = vmatpush.msra.mxu3 %v1933_v41  ;;  %1248 = vmatpush.msra.mxu0 %v1937_v42 }
 0x3b9   : > { %v1017_v45 = vadd.f32 %v1016_v44, %v2375_v12  ;;  %v1932_v44 = vld [vmem:[%s2784_s2 + $0xa8] sm:$0xff]  ;;  %1209 = vmatpush.msra.mxu2 %v1928_v43 }
 0x3ba   : > { %1229 = vmatpush.msra.mxu3 %v1932_v44 }
 0x3bb   : > { %v1020_v46 = vsel %vm565_vm0, %v1017_v45, 0.0 }
 0x3bc   : > { %1021 = vadd.xlane.f32.xlu0 %v1020_v46  ;;  %v1927_v46 = vld [vmem:[%s2784_s2 + $0x80] sm:$0xff]  ;;  %1230 = vmatpush.msra.mxu3 %v1931_v47 }
 0x3bd   : > { %1210 = vmatpush.msra.mxu2 %v1927_v46 }
 0x3bf   : > { %1267 = vmatpush.msrb.mxu2 %v1942_v49 }
 0x3c1   : > { %1268 = vmatpush.msrb.mxu2 %v1941_v50 }
 0x3c3   : > { %1269 = vmatpush.msrb.mxu2 %v1940_v52 }
 0x42f   : > { %v1022_v54 = vpop.xlane.xlu0 %1021 }
 0x430   : > { %v1030_v55 = vmul.f32 %v2471_v53, %v1022_v54 }
 0x432   : > { %v1031_v56 = vsub.f32 %v1017_v45, %v1030_v55  ;;  %v1936_v45 = vld [vmem:[%s2784_s2 + $0xc8] sm:$0xff]  ;;  %v1939_v55 = vld [vmem:[%s2784_s2 + $0xe0] sm:$0xff] }
 0x433   : > { %1249 = vmatpush.msra.mxu0 %v1936_v45  ;;  %1270 = vmatpush.msrb.mxu2 %v1939_v55 }
 0x434   : > { %v1032_v57 = vmul.f32 %v1031_v56, %v1031_v56 }
 0x435   : > { %1250 = vmatpush.msra.mxu0 %v1935_v48 }
 0x436   : > { %v1033_v12 = vsel %vm565_vm0, %v1032_v57, 0.0 }
 0x437   : > { %1034 = vadd.xlane.f32.xlu0 %v1033_v12 }
 0x4aa   : > { %v1035_v1 = vpop.xlane.xlu0 %1034 }
 0x4ab   : > { %v1036_v2 = vmul.f32 %v1035_v1, %v2471_v53  ;;  %v2069_v1 = vld [vmem:[%s2795_s13] ss:$0 sm:$0xff] }
 0x4ad   : > { %v1037_v4 = vadd.f32 1e-05, %v1036_v2 }
 0x4af   : > { %2101 = vrsqrt.f32 %v1037_v4  ;;  %vm1044_vm4 = vweird.f32 %v1037_v4 }
 0x4b5   : > { %v2102_v6 = vpop.eup %2101 }
 0x4b6   : > { %v1039_v7 = vmul.f32 %v2102_v6, %v1037_v4  ;;  %vm1045_vm3 = vweird.f32 %v2102_v6  ;;  %v2071_v4 = vld [vmem:[%s2785_s3 + $0x4] ss:$0 sm:$0xff] }
 0x4b7   : > { %vm1046_vm5 = vmor %vm1044_vm4, %vm1045_vm3 }
 0x4b8   : > { %v1040_v8 = vmul.f32 %v2102_v6, %v1039_v7  ;;  %v2072_v7 = vld [vmem:[%s2785_s3 + $0x5] ss:$0 sm:$0xff] }
 0x4ba   : > { %v1041_v9 = vmul.f32 0.5, %v1040_v8  ;;  %v2073_v8 = vld [vmem:[%s2785_s3 + $0x7] ss:$0 sm:$0xff] }
 0x4bc   : > { %v1042_v10 = vsub.f32 1.5, %v1041_v9 }
 0x4be   : > { %v1043_v11 = vmul.f32 %v2102_v6, %v1042_v10 }
 0x4c0   : > { %v1047_v14 = vsel %vm1046_vm5, %v2102_v6, %v1043_v11 }
 0x4c1   : > { %v1048_v15 = vmul.f32 %v1047_v14, %v1031_v56  ;;  %v2070_v14 = vld [vmem:[%s2785_s3 + $0x6] ss:$0 sm:$0xff] }
 0x4c3   : > { %v1052_v17 = vmul.f32 %v2064_v13, %v1048_v15 }
 0x4c5   : > { %v1056_v18 = vadd.f32 %v2065_v16, %v1052_v17 }
 0x4c7   : > { %1925 = vmatmul.msk.f32.vlgmr.msrb.gmra.mxu0 %vm565_vm0, %v1056_v18 }
 0x544   : > { %v1085_v23 = vpop.f32.mrf.mxu0 }
 0x545   : > { %v1086_v24 = vadd.f32 %v2066_v22, %v1085_v23 }
 0x547   : > { %v1088_v25 = vmax.f32 %v1086_v24, 0.0 }
 0x549   : > { %1926 = vmatmul.msk.f32.vlgmr.msrb.gmra.mxu1 %vm1101_vm6, %v1088_v25 }
 0x5c6   : > { %v1122_v27 = vpop.f32.mrf.mxu1 }
 0x5c7   : > { %v1123_v28 = vadd.f32 %v2067_v26, %v1122_v27 }
 0x5c9   : > { %v1125_v29 = vadd.f32 %v1123_v28, %v1056_v18 }
 0x5cb   : > { %v1128_v30 = vsel %vm565_vm0, %v1125_v29, 0.0 }
 0x5cc   : > { %1129 = vadd.xlane.f32.xlu0 %v1128_v30 }
 0x63f   : > { %v1130_v31 = vpop.xlane.xlu0 %1129 }
 0x640   : > { %v1131_v32 = vmul.f32 %v1130_v31, %v2471_v53 }
 0x642   : > { %v1132_v34 = vsub.f32 %v1125_v29, %v1131_v32 }
 0x644   : > { %v1133_v35 = vmul.f32 %v1132_v34, %v1132_v34 }
 0x646   : > { %v1134_v36 = vsel %vm565_vm0, %v1133_v35, 0.0 }
 0x647   : > { %1135 = vadd.xlane.f32.xlu1 %v1134_v36 }
 0x6ba   : > { %v1136_v51 = vpop.xlane.xlu1 %1135 }
 0x6bb   : > { %v1137_v54 = vmul.f32 %v1136_v51, %v2471_v53 }
 0x6bd   : > { %v1138_v56 = vadd.f32 1e-05, %v1137_v54 }
 0x6bf   : > { %2103 = vrsqrt.f32 %v1138_v56  ;;  %vm1145_vm8 = vweird.f32 %v1138_v56 }
 0x6c5   : > { %v2104_v57 = vpop.eup %2103 }
 0x6c6   : > { %v1140_v12 = vmul.f32 %v2104_v57, %v1138_v56  ;;  %vm1146_vm7 = vweird.f32 %v2104_v57 }
 0x6c7   : > { %vm1147_vm9 = vmor %vm1145_vm8, %vm1146_vm7 }
 0x6c8   : > { %v1141_v58 = vmul.f32 %v2104_v57, %v1140_v12 }
 0x6ca   : > { %v1142_v59 = vmul.f32 0.5, %v1141_v58 }
 0x6cc   : > { %v1143_v60 = vsub.f32 1.5, %v1142_v59 }
 0x6ce   : > { %v1144_v61 = vmul.f32 %v2104_v57, %v1143_v60 }
 0x6d0   : > { %v1148_v63 = vsel %vm1147_vm9, %v2104_v57, %v1144_v61 }
 0x6d1   : > { %v1149_v0 = vmul.f32 %v1148_v63, %v1132_v34 }
 0x6d3   : > { %v1153_v2 = vmul.f32 %v2068_v62, %v1149_v0 }
 0x6d5   : > { %v2584_v3 = vadd.f32 %v2069_v1, %v1153_v2 }
 0x6d7   : > { %1947 = vmatmul.msk.f32.vlgmr.msra.gmra.mxu2 %vm565_vm0, %v2584_v3  ;;  %1948 = vmatmul.msk.f32.vlgmr.msra.gmra.mxu3 %vm565_vm0, %v2584_v3 }
 0x6d8   : > { %1949 = vmatmul.msk.f32.vlgmr.msra.gmra.mxu0 %vm565_vm0, %v2584_v3 }
 0x6df   : > { %1950 = vmatmul.msk.f32.vlgmr.msrb.gmra.mxu2 %vm565_vm0, %v2584_v3 }
 0x755   : > { %v1252_v15 = vpop.f32.mrf.mxu0 }
 0x756   : > { %v1253_v16 = vadd.f32 %v2070_v14, %v1252_v15  ;;  %v1963_v15 = vld [vmem:[%s2786_s4 + $0x20] sm:$0xff] }
 0x75a   : > { %v1212_v5 = vpop.f32.mrf.mxu2  ;;  %v1232_v9 = vpop.f32.mrf.mxu3 }
 0x75b   : > { %v2597_v6 = vadd.f32 %v2071_v4, %v1212_v5  ;;  %v2607_v11 = vadd.f32 %v2072_v7, %v1232_v9 }
 0x75d   : > { %1276 = vrot.lane.b32.xlu0 %v2597_v6, %s2191_s27  ;;  %v2053_v54 = vpack.i.bf16 %v1253_v16, %v2607_v11 }
 0x762   : > { %v1272_v10 = vpop.f32.mrf.mxu2 }
 0x763   : > { %v2609_v13 = vadd.f32 %v2073_v8, %v1272_v10  ;;  %v1964_v10 = vld [vmem:[%s2786_s4 + $0x28] sm:$0xff] }
 0x765   : > { %1357 = vrot.lane.b32.xlu2 %v2609_v13, %s2191_s27  ;;  %1303 = vrot.lane.b32.xlu0 %v2607_v11, %s2191_s27  ;;  %v2048_v55 = vpack.i.bf16 %v2609_v13, %v2597_v6 }
 0x76d   : > { %1330 = vrot.lane.b32.xlu0 %v1253_v16, %s2191_s27 }
 0x7bf   : > { %v1358_v17 = vpop.permute.xlu2 %1357 }
 0x7c0   : > { %1957 = vmatpush.xpose.msk.msra.mxu2 %vm655_vm1, %v1358_v17 }
 0x7c3   : > { %1958 = vmatmul.msk.f32.vlgmr.msra.gmra.mxu2 %vm655_vm1, %v2609_v13 }
 0x7cf   : > { %v1277_v18 = vpop.permute.xlu0 %1276 }
 0x7d0   : > { %1951 = vmatpush.xpose.msk.msrb.mxu3 %vm655_vm1, %v1277_v18 }
 0x7d3   : > { %1952 = vmatmul.msk.f32.vlgmr.msrb.gmra.mxu3 %vm655_vm1, %v2597_v6 }
 0x7d7   : > { %v1304_v19 = vpop.permute.xlu0 %1303 }
 0x7d8   : > { %1953 = vmatpush.xpose.msk.msrb.mxu0 %vm655_vm1, %v1304_v19 }
 0x7db   : > { %1954 = vmatmul.msk.f32.vlgmr.msrb.gmra.mxu0 %vm655_vm1, %v2607_v11  ;;  %v1965_v11 = vld [vmem:[%s2786_s4 + $0x30] sm:$0xff] }
 0x7df   : > { %v1331_v20 = vpop.permute.xlu0 %1330 }
 0x7e0   : > { %1955 = vmatpush.xpose.msk.msra.mxu1 %vm655_vm1, %v1331_v20 }
 0x7e3   : > { %1956 = vmatmul.msk.f32.vlgmr.msra.gmra.mxu1 %vm655_vm1, %v1253_v16  ;;  %v1966_v16 = vld [vmem:[%s2786_s4 + $0x38] sm:$0xff] }
 0x846   : > { %v1380_v30 = vpop.f32.mrf.mxu2 }
 0x847   : > { %v1381_v31 = vadd.f32 %v2426_v33, %v1380_v30 }
 0x849   : > { %v1392_v32 = vsel %vm655_vm1, %v1381_v31, -inf }
 0x856   : > { %v1299_v21 = vpop.f32.mrf.mxu3 }
 0x857   : > { %v1300_v22 = vadd.f32 %v2426_v33, %v1299_v21 }
 0x858   : > { %v1326_v23 = vpop.f32.mrf.mxu0 }
 0x859   : > { %v1327_v24 = vadd.f32 %v2426_v33, %v1326_v23  ;;  %v1383_v25 = vsel %vm655_vm1, %v1300_v22, -inf }
 0x85a   : > { %1384 = vmax.xlane.f32.xlu2 %v1383_v25 }
 0x85b   : > { %v1386_v26 = vsel %vm655_vm1, %v1327_v24, -inf }
 0x85c   : > { %1387 = vmax.xlane.f32.xlu0 %v1386_v26 }
 0x860   : > { %v1353_v27 = vpop.f32.mrf.mxu1 }
 0x861   : > { %v1354_v28 = vadd.f32 %v2426_v33, %v1353_v27 }
 0x863   : > { %v1389_v29 = vsel %vm655_vm1, %v1354_v28, -inf }
 0x864   : > { %1390 = vmax.xlane.f32.xlu1 %v1389_v29 }
 0x86c   : > { %1393 = vmax.xlane.f32.xlu1 %v1392_v32 }
 0x8cd   : > { %v1385_v34 = vpop.xlane.xlu2 %1384 }
 0x8ce   : > { %v1395_v35 = vsub.f32 %v1300_v22, %v1385_v34 }
 0x8cf   : > { %v1388_v36 = vpop.xlane.xlu0 %1387 }
 0x8d0   : > { %v1399_v37 = vmul.f32 1.442695, %v1395_v35  ;;  %v1396_v38 = vsub.f32 %v1327_v24, %v1388_v36 }
 0x8d2   : > { %2105 = vpow2.f32 %v1399_v37  ;;  %v1401_v39 = vmul.f32 1.442695, %v1396_v38 }
 0x8d4   : > { %2107 = vpow2.f32 %v1401_v39 }
 0x8d7   : > { %v1391_v40 = vpop.xlane.xlu1 %1390 }
 0x8d8   : > { %v2106_v41 = vpop.eup %2105  ;;  %v1397_v42 = vsub.f32 %v1354_v28, %v1391_v40  ;;  %v2074_v28 = vld [vmem:[%s2787_s5 + $0x1] ss:$0 sm:$0xff]  ;;  %v1977_v40 = vld [vmem:[%s2788_s6 + $0x38] sm:$0xff] }
 0x8d9   : > { %v1407_v43 = vsel %vm655_vm1, %v2106_v41, 0.0 }
 0x8da   : > { %v2108_v44 = vpop.eup %2107  ;;  %v1403_v45 = vmul.f32 1.442695, %v1397_v42  ;;  %1408 = vadd.xlane.f32.xlu1 %v1407_v43  ;;  %v1974_v42 = vld [vmem:[%s2788_s6 + $0x20] sm:$0xff]  ;;  %v1987_v43 = vld [vmem:[%s2790_s8 + $0x78] sm:$0xff] }
 0x8db   : > { %v1410_v33 = vsel %vm655_vm1, %v2108_v44, 0.0 }
 0x8dc   : > { %2109 = vpow2.f32 %v1403_v45  ;;  %1411 = vadd.xlane.f32.xlu2 %v1410_v33  ;;  %v1985_v45 = vld [vmem:[%s2790_s8 + $0x68] sm:$0xff] }
 0x8df   : > { %v1394_v46 = vpop.xlane.xlu1 %1393 }
 0x8e0   : > { %v1398_v47 = vsub.f32 %v1381_v31, %v1394_v46 }
 0x8e2   : > { %v2110_v48 = vpop.eup %2109  ;;  %v1405_v49 = vmul.f32 1.442695, %v1398_v47  ;;  %v1984_v47 = vld [vmem:[%s2790_s8 + $0x60] sm:$0xff] }
 0x8e3   : > { %v1413_v50 = vsel %vm655_vm1, %v2110_v48, 0.0 }
 0x8e4   : > { %2111 = vpow2.f32 %v1405_v49  ;;  %1414 = vadd.xlane.f32.xlu0 %v1413_v50  ;;  %v1983_v49 = vld [vmem:[%s2790_s8 + $0x58] sm:$0xff] }
 0x8ea   : > { %v2112_v51 = vpop.eup %2111 }
 0x8eb   : > { %v1416_v52 = vsel %vm655_vm1, %v2112_v51, 0.0 }
 0x8ec   : > { %1417 = vadd.xlane.f32.xlu1 %v1416_v52 }
 0x8f4   : > { %2054 = vrot.lane.b32.xlu2 %v2053_v54, %s2192_s21 }
 0x905   : > { %2049 = vrot.lane.b32.xlu1 %v2048_v55, %s2192_s21  ;;  %s2820_s21 = sld [smem:[#allocation13_spill]] }
 0x94d   : > { %v1409_v0 = vpop.xlane.xlu1 %1408 }
 0x94f   : > { %v1412_v56 = vpop.xlane.xlu2 %1411 }
 0x950   : > { %2113 = vrcp.f32 %v1412_v56 }
 0x956   : > { %v2114_v57 = vpop.eup %2113 }
 0x957   : > { %v2055_v12 = vpop.permute.xlu2 %2054  ;;  %v1415_v58 = vpop.xlane.xlu0 %1414  ;;  %v1424_v61 = vmul.f32 %v2114_v57, %v2108_v44  ;;  %v1986_v44 = vld [vmem:[%s2790_s8 + $0x70] sm:$0xff]  ;;  %v2075_v57 = vld [vmem:[%s2792_s10 + $0x1] ss:$0 sm:$0xff] }
 0x958   : > { %v2057_v59 = vunpack.i.h.bf16 %v2055_v12  ;;  %v2056_v60 = vunpack.i.l.bf16 %v2055_v12  ;;  %2115 = vrcp.f32 %v1415_v58 }
 0x959   : > { %2117 = vrcp.f32 %v1409_v0  ;;  %v1980_v0 = vld [vmem:[%s2790_s8 + $0x40] sm:$0xff] }
 0x95a   : > { %1474 = vmatpush.msra.mxu0 %v2056_v60  ;;  %1500 = vmatpush.msrb.mxu1 %v2057_v59  ;;  %v2076_v59 = vld [vmem:[%s2793_s11 + $0x1] ss:$0 sm:$0xff] }
 0x95b   : > { %1960 = vmatmul.msk.f32.vlgmr.msra.gmra.mxu0 %vm655_vm1, %v1424_v61 }
 0x95c   : > { %1577 = vmatpush.msrb.mxu0 %v1964_v10  ;;  %1600 = vmatpush.msra.mxu1 %v1965_v11 }
 0x95e   : > { %v2116_v62 = vpop.eup %2115  ;;  %1735 = vmatpush.msra.mxu0 %v1987_v43 }
 0x95f   : > { %v1425_v63 = vmul.f32 %v2116_v62, %v2110_v48  ;;  %v1418_v1 = vpop.xlane.xlu1 %1417  ;;  %v2118_v2 = vpop.eup %2117  ;;  %v1982_v62 = vld [vmem:[%s2790_s8 + $0x50] sm:$0xff] }
 0x960   : > { %2119 = vrcp.f32 %v1418_v1  ;;  %v1423_v8 = vmul.f32 %v2118_v2, %v2106_v41  ;;  %v1975_v41 = vld [vmem:[%s2788_s6 + $0x28] sm:$0xff]  ;;  %1736 = vmatpush.msra.mxu0 %v1986_v44  ;;  %v2077_v1 = vld [vmem:[%s2789_s7 + $0x1] ss:$0 sm:$0xff] }
 0x961   : > { %1961 = vmatmul.msk.f32.vlgmr.msrb.gmra.mxu1 %vm655_vm1, %v1425_v63  ;;  %v1981_v63 = vld [vmem:[%s2790_s8 + $0x48] sm:$0xff] }
 0x962   : > { %1737 = vmatpush.msra.mxu0 %v1985_v45 }
 0x964   : > { %1738 = vmatpush.msra.mxu0 %v1984_v47 }
 0x966   : > { %v2120_v4 = vpop.eup %2119  ;;  %1739 = vmatpush.msra.mxu0 %v1983_v49 }
 0x967   : > { %v1426_v9 = vmul.f32 %v2120_v4, %v2112_v51 }
 0x968   : > { %1740 = vmatpush.msra.mxu0 %v1982_v62 }
 0x96a   : > { %1741 = vmatpush.msra.mxu0 %v1981_v63 }
 0x96c   : > { %1742 = vmatpush.msra.mxu0 %v1980_v0 }
 0x977   : > { %v2050_v5 = vpop.permute.xlu1 %2049 }
 0x978   : > { %v2052_v6 = vunpack.i.h.bf16 %v2050_v5  ;;  %v2051_v7 = vunpack.i.l.bf16 %v2050_v5 }
 0x97a   : > { %1448 = vmatpush.msra.mxu3 %v2051_v7  ;;  %1526 = vmatpush.msrb.mxu2 %v2052_v6  ;;  %v2078_v6 = vld [vmem:[%s2791_s9 + $0x1] ss:$0 sm:$0xff] }
 0x97b   : > { %1959 = vmatmul.msk.f32.vlgmr.msra.gmra.mxu3 %vm655_vm1, %v1423_v8  ;;  %1962 = vmatmul.msk.f32.vlgmr.msrb.gmra.mxu2 %vm655_vm1, %v1426_v9 }
 0x97c   : > { %1554 = vmatpush.msrb.mxu3 %v1963_v15  ;;  %1623 = vmatpush.msra.mxu2 %v1966_v16 }
 0x97e   : > { %1701 = vmatpush.msra.mxu3 %v1977_v40 }
 0x9d8   : > { %v1476_v13 = vpop.f32.mrf.mxu0 }
 0x9d9   : > { %1968 = vmatmul.msk.f32.vlgmr.msrb.gmra.mxu0 %vm655_vm1, %v1476_v13 }
 0x9de   : > { %v1502_v14 = vpop.f32.mrf.mxu1 }
 0x9df   : > { %1969 = vmatmul.msk.f32.vlgmr.msra.gmra.mxu1 %vm655_vm1, %v1502_v14 }
 0x9fe   : > { %v1450_v17 = vpop.f32.mrf.mxu3  ;;  %v1528_v18 = vpop.f32.mrf.mxu2 }
 0x9ff   : > { %1967 = vmatmul.msk.f32.vlgmr.msrb.gmra.mxu3 %vm655_vm1, %v1450_v17  ;;  %1970 = vmatmul.msk.f32.vlgmr.msra.gmra.mxu2 %vm655_vm1, %v1528_v18 }
 0xa56   : > { %v1579_v19 = vpop.f32.mrf.mxu0 }
 0xa57   : > { %v1629_v22 = vsel %vm565_vm0, %v1579_v19, 0.0 }
 0xa5c   : > { %v1602_v20 = vpop.f32.mrf.mxu1 }
 0xa5d   : > { %v1631_v26 = vsel %vm565_vm0, %v1602_v20, 0.0 }
 0xa82   : > { %v1556_v21 = vpop.f32.mrf.mxu3  ;;  %v1625_v25 = vpop.f32.mrf.mxu2 }
 0xa83   : > { %v1628_v23 = vsel %vm565_vm0, %v1556_v21, 0.0  ;;  %v1633_v29 = vsel %vm565_vm0, %v1625_v25, 0.0 }
 0xa84   : > { %v1630_v24 = vadd.f32 %v1629_v22, %v1628_v23 }
 0xa86   : > { %v1632_v27 = vadd.f32 %v1631_v26, %v1630_v24  ;;  %v2079_v26 = vld [vmem:[%s2794_s12 + $0x1] ss:$0 sm:$0xff] }
 0xa88   : > { %v1634_v30 = vadd.f32 %v1633_v29, %v1632_v27  ;;  %v2080_v29 = vld [vmem:[%s2795_s13 + $0x1] ss:$0 sm:$0xff] }
 0xa8a   : > { %v1640_v31 = vadd.f32 %v2074_v28, %v1634_v30 }
 0xa8c   : > { %v1641_v32 = vadd.f32 %v1640_v31, %v2584_v3  ;;  %v1976_v3 = vld [vmem:[%s2788_s6 + $0x30] sm:$0xff] }
 0xa8d   : > { %1702 = vmatpush.msra.mxu3 %v1976_v3 }
 0xa8e   : > { %v1646_v34 = vsel %vm565_vm0, %v1641_v32, 0.0 }
 0xa8f   : > { %1647 = vadd.xlane.f32.xlu0 %v1646_v34  ;;  %1703 = vmatpush.msra.mxu3 %v1975_v41 }
 0xa91   : > { %1704 = vmatpush.msra.mxu3 %v1974_v42 }
 0xb02   : > { %v1648_v35 = vpop.xlane.xlu0 %1647 }
 0xb03   : > { %v1649_v36 = vmul.f32 %v1648_v35, %v2471_v53 }
 0xb05   : > { %v1650_v37 = vsub.f32 %v1641_v32, %v1649_v36 }
 0xb07   : > { %v1651_v38 = vmul.f32 %v1650_v37, %v1650_v37 }
 0xb09   : > { %v1652_v39 = vsel %vm565_vm0, %v1651_v38, 0.0 }
 0xb0a   : > { %1653 = vadd.xlane.f32.xlu1 %v1652_v39 }
 0xb7d   : > { %v1654_v33 = vpop.xlane.xlu1 %1653 }
 0xb7e   : > { %v1655_v46 = vmul.f32 %v1654_v33, %v2471_v53 }
 0xb80   : > { %v1656_v48 = vadd.f32 1e-05, %v1655_v46  ;;  %v2081_v46 = vld [vmem:[%s2796_s14] ss:$0 sm:$0xff] }
 0xb82   : > { %2121 = vrsqrt.f32 %v1656_v48  ;;  %vm1663_vm11 = vweird.f32 %v1656_v48 }
 0xb88   : > { %v2122_v50 = vpop.eup %2121 }
 0xb89   : > { %v1658_v51 = vmul.f32 %v2122_v50, %v1656_v48  ;;  %vm1664_vm10 = vweird.f32 %v2122_v50  ;;  %v2082_v48 = vld [vmem:[%s2820_s21] ss:$0 sm:$0xff] }
 0xb8a   : > { %vm1665_vm12 = vmor %vm1663_vm11, %vm1664_vm10 }
 0xb8b   : > { %v1659_v52 = vmul.f32 %v2122_v50, %v1658_v51 }
 0xb8d   : > { %v1660_v54 = vmul.f32 0.5, %v1659_v52 }
 0xb8f   : > { %v1661_v55 = vsub.f32 1.5, %v1660_v54 }
 0xb91   : > { %v1662_v56 = vmul.f32 %v2122_v50, %v1661_v55 }
 0xb93   : > { %v1666_v12 = vsel %vm1665_vm12, %v2122_v50, %v1662_v56 }
 0xb94   : > { %v1667_v58 = vmul.f32 %v1666_v12, %v1650_v37 }
 0xb96   : > { %v1671_v60 = vmul.f32 %v2075_v57, %v1667_v58 }
 0xb98   : > { %v1675_v61 = vadd.f32 %v2076_v59, %v1671_v60 }
 0xb9a   : > { %1979 = vmatmul.msk.f32.vlgmr.msra.gmra.mxu3 %vm565_vm0, %v1675_v61 }
 0xc1d   : > { %v1706_v2 = vpop.f32.mrf.mxu3 }
 0xc1e   : > { %v1707_v4 = vadd.f32 %v2077_v1, %v1706_v2 }
 0xc20   : > { %v1709_v5 = vmax.f32 %v1707_v4, 0.0 }
 0xc22   : > { %1989 = vmatmul.msk.f32.vlgmr.msra.gmra.mxu0 %vm1101_vm6, %v1709_v5 }
 0xc9f   : > { %v1744_v7 = vpop.f32.mrf.mxu0 }
 0xca0   : > { %v1745_v8 = vadd.f32 %v2078_v6, %v1744_v7 }
 0xca2   : > { %v1747_v9 = vadd.f32 %v1745_v8, %v1675_v61 }
 0xca4   : > { %v1752_v10 = vsel %vm565_vm0, %v1747_v9, 0.0 }
 0xca5   : > { %1753 = vadd.xlane.f32.xlu0 %v1752_v10 }
 0xd18   : > { %v1754_v11 = vpop.xlane.xlu0 %1753 }
 0xd19   : > { %v1755_v13 = vmul.f32 %v1754_v11, %v2471_v53 }
 0xd1b   : > { %v1756_v14 = vsub.f32 %v1747_v9, %v1755_v13 }
 0xd1d   : > { %v1757_v15 = vmul.f32 %v1756_v14, %v1756_v14 }
 0xd1f   : > { %v1758_v16 = vsel %vm565_vm0, %v1757_v15, 0.0 }
 0xd20   : > { %1759 = vadd.xlane.f32.xlu0 %v1758_v16 }
 0xd93   : > { %v1760_v17 = vpop.xlane.xlu0 %1759 }
 0xd94   : > { %v1761_v18 = vmul.f32 %v1760_v17, %v2471_v53 }
 0xd96   : > { %v1762_v19 = vadd.f32 1e-05, %v1761_v18 }
 0xd98   : > { %2123 = vrsqrt.f32 %v1762_v19  ;;  %vm1769_vm14 = vweird.f32 %v1762_v19 }
 0xd9e   : > { %v2124_v20 = vpop.eup %2123 }
 0xd9f   : > { %v1764_v21 = vmul.f32 %v2124_v20, %v1762_v19  ;;  %vm1770_vm13 = vweird.f32 %v2124_v20 }
 0xda0   : > { %vm1771_vm15 = vmor %vm1769_vm14, %vm1770_vm13 }
 0xda1   : > { %v1765_v22 = vmul.f32 %v2124_v20, %v1764_v21 }
 0xda3   : > { %v1766_v23 = vmul.f32 0.5, %v1765_v22 }
 0xda5   : > { %v1767_v24 = vsub.f32 1.5, %v1766_v23 }
 0xda7   : > { %v1768_v25 = vmul.f32 %v2124_v20, %v1767_v24 }
 0xda9   : > { %v1772_v27 = vsel %vm1771_vm15, %v2124_v20, %v1768_v25 }
 0xdaa   : > { %v1773_v28 = vmul.f32 %v1772_v27, %v1756_v14 }
 0xdac   : > { %v1777_v30 = vmul.f32 %v2079_v26, %v1773_v28 }
 0xdae   : > { %v1781_v31 = vadd.f32 %v2080_v29, %v1777_v30 }
 0xdb0   : > { %v1784_v32 = vsel %vm565_vm0, %v1781_v31, 0.0 }
 0xdb1   : > { %1785 = vadd.xlane.f32.xlu2 %v1784_v32 }
 0xe24   : > { %v1786_v34 = vpop.xlane.xlu2 %1785 }
 0xe25   : > { %v1787_v35 = vmul.f32 %v1786_v34, %v2471_v53 }
 0xe27   : > { %v1788_v36 = vsub.f32 %v1781_v31, %v1787_v35 }
 0xe29   : > { %v1789_v37 = vmul.f32 %v1788_v36, %v1788_v36 }
 0xe2b   : > { %v1790_v38 = vsel %vm565_vm0, %v1789_v37, 0.0 }
 0xe2c   : > { %1791 = vadd.xlane.f32.xlu0 %v1790_v38 }
 0xe9f   : > { %v1792_v39 = vpop.xlane.xlu0 %1791 }
 0xea0   : > { %v1793_v40 = vmul.f32 %v1792_v39, %v2471_v53 }
 0xea2   : > { %v1794_v3 = vadd.f32 1e-05, %v1793_v40 }
 0xea4   : > { %2125 = vrsqrt.f32 %v1794_v3  ;;  %vm1801_vm2 = vweird.f32 %v1794_v3 }
 0xeaa   : > { %v2126_v41 = vpop.eup %2125 }
 0xeab   : > { %v1796_v42 = vmul.f32 %v2126_v41, %v1794_v3  ;;  %vm1802_vm1 = vweird.f32 %v2126_v41 }
 0xeac   : > { %vm1803_vm3 = vmor %vm1801_vm2, %vm1802_vm1 }
 0xead   : > { %v1797_v43 = vmul.f32 %v2126_v41, %v1796_v42 }
 0xeaf   : > { %v1798_v44 = vmul.f32 0.5, %v1797_v43 }
 0xeb1   : > { %v1799_v45 = vsub.f32 1.5, %v1798_v44 }
 0xeb3   : > { %v1800_v33 = vmul.f32 %v2126_v41, %v1799_v45 }
 0xeb5   : > { %v1804_v53 = vsel %vm1803_vm3, %v2126_v41, %v1800_v33 }
 0xeb6   : > { %v1805_v47 = vmul.f32 %v1804_v53, %v1788_v36 }
 0xeb8   : > { %v1809_v49 = vmul.f32 %v2081_v46, %v1805_v47 }
 0xeba   : > { %v1813_v50 = vadd.f32 %v2082_v48, %v1809_v49 }
 0xebc   : > { %1814 = vst.msk [vmem:[%s523_s28] sm:$0xff] %vm565_vm0, %v1813_v50 }
 0xebd   : > { %2154 = shalt.err (!%p2151_p3)
}
 0xebe   : > { %1996 = dma.vmem_to_hbm [thread:$0]  (%p2317_p5), %s1829_s25, 128, %s1831_s23, %s1816_s19  }
 0xebf PF: > { %s2821_s30 = sld [smem:[#allocation7_spill]] }
 0xec0   : > { %s2822_s27 = sld [smem:[#allocation5_spill]] }
 0xec5   : > { %p2002_p4 = scmp.ge.s32.totalorder %s2821_s30, 2 }
 0xec6   : > { %s1842_s28 = sand.u32 1, %s2822_s27  }
 0xec7   : > { %p1999_p7 = pnand %p2002_p4, %p2321_p6  ;;  %s1843_s15 = scalar_lea.sflag [#allocation3], %s1842_s28 }
 0xec9   : > { %p2000_p8 = pneg %p1999_p7 }
 0xecb   : > { %2172 = dma.done.wait (%p2000_p8), %s1843_s15, 128  }
 0xecc   : > { %2174 = vsyncadd (%p2000_p8), %s1843_s15, 4294967168  ;;  %s2824_s24 = sld [smem:[#allocation8_spill]]  ;;  %s2827_s21 = smov %s2181_s22 }
 0xecd   : > { %s2825_s26 = sld [smem:[#allocation6_spill]] }
 0xece   : > { %s2826_s23 = sld [smem:[#allocation9_spill]] }
 0xed2   : > { %p26_p9 = scmp.ge.s32.totalorder %s2824_s24, 4  }
 0xed3   : > { %s2828_s22 = smov %s2825_s26 }
 0xed4   :  { %28 = sbr.rel (!%p26_p9) target bundleno = 6 (0x6), region = 134 }
 0xed9   :  { %1849 = vsyncpa [#allocation3], 1 }
 0xeda   :  { %1851 = vsyncpa [#allocation3 + $0x1], 1 }

</bundles_post_ra>
